<compile_context>
chip_gen: v7x
topology: tpu7x:2x2x1
jax: 0.10.0
libtpu: 0.0.40
codegen_flags: <defaults>
</compile_context>

<pallas_src>
import jax
import jax.numpy as jnp
import numpy as np
from jax.experimental import pallas as pl
from jax.experimental.pallas import tpu as pltpu

# ----------------------------------------------------------------------------
# Hyperparameters (chosen so that sum_i floor((L-fs_i+1)/pool) == 95, matching
# the module's hard-coded fc1 input dim of 95 * n_filters).
# ----------------------------------------------------------------------------
VOCAB = 50
EMBED = 32
N_FILTERS = 8
FILTER_SIZES = (5, 7)
POOL = 2
HIDDEN = 32
N_CLASSES = 2
SEQ_LEN = 100
BATCH = 2

LOUT = tuple(SEQ_LEN - fs + 1 for fs in FILTER_SIZES)   # (96, 94)
P = tuple(l // POOL for l in LOUT)                      # (48, 47)
P_TOT = sum(P)                                          # 95
assert P_TOT == 95, "shapes must match the module's hard-coded 95*n_filters fc1"


# ----------------------------------------------------------------------------
# Fused kernel: one batch element per grid step; everything stays on-chip.
# ----------------------------------------------------------------------------
def fused_cnn_kernel(ids_ref, table_ref, w1_ref, b1_ref, w2_ref, b2_ref,
                     wfc_ref, bfc_ref, out_ref, emb_scr, conv_scr):
    # ids_ref  : (SEQ_LEN, 1)   int32 token ids for this batch element
    # table_ref: (VOCAB, EMBED) embedding table (fits whole in VMEM)
    # w*_ref   : (fs, EMBED, N_FILTERS) pre-transposed conv weights
    # b*_ref   : (1, N_FILTERS)
    # wfc_ref  : (N_CLASSES, P_TOT, N_FILTERS) collapsed fc1@fc2, flatten-order folded in
    # bfc_ref  : (1, N_CLASSES)
    # out_ref  : (1, N_CLASSES)
    # emb_scr  : VMEM (SEQ_LEN, EMBED)  scratch — embedded sequence
    # conv_scr : VMEM (LOUT[0], N_FILTERS) scratch — conv output, reused by both banks

    # ---- embedding lookup as an exact one-hot matmul (replaces XLA gather) --
    ids = ids_ref[...]                                              # (L, 1) int32
    vocab_iota = jax.lax.broadcasted_iota(jnp.int32, (SEQ_LEN, VOCAB), 1)
    one_hot = (ids == vocab_iota).astype(jnp.float32)               # (L, V)
    emb_scr[...] = jnp.dot(one_hot, table_ref[...],
                           preferred_element_type=jnp.float32)      # (L, E)

    # ---- conv bank: fs contiguous matmuls -> bias -> max-pool(2) -> ReLU ----
    def conv_pool_relu(w_ref, b_ref, fs, lout, p):
        w = w_ref[...]                                              # (fs, E, F)
        acc = jnp.zeros((lout, N_FILTERS), jnp.float32)
        for k in range(fs):                                         # contiguous loads
            acc = acc + jnp.dot(emb_scr[pl.ds(k, lout), :], w[k],
                                preferred_element_type=jnp.float32)
        conv_scr[0:lout, :] = acc + b_ref[...]                      # (lout, F)
        even = conv_scr[pl.ds(0, p, stride=POOL), :]                # (p, F)
        odd = conv_scr[pl.ds(1, p, stride=POOL), :]                 # (p, F)
        return jnp.maximum(jnp.maximum(even, odd), 0.0)             # pool + ReLU

    rp0 = conv_pool_relu(w1_ref, b1_ref, FILTER_SIZES[0], LOUT[0], P[0])
    rp1 = conv_pool_relu(w2_ref, b2_ref, FILTER_SIZES[1], LOUT[1], P[1])

    # ---- collapsed fc1 @ fc2 (dropout = identity in eval mode) --------------
    # out[c] = sum_{pg,f} relu_pooled[pg, f] * wfc[c, pg, f] + bfc[c]
    # TODO(synk): training-mode dropout between fc1 and fc2 is not implemented.
    def full_sum(x):                                                # (m, n) -> (1, 1)
        return jnp.sum(jnp.sum(x, axis=0, keepdims=True), axis=1, keepdims=True)

    for c in range(N_CLASSES):
        s = full_sum(rp0 * wfc_ref[c, 0:P[0], :])
        s = s + full_sum(rp1 * wfc_ref[c, P[0]:P_TOT, :])
        out_ref[0:1, c:c + 1] = s + bfc_ref[0:1, c:c + 1]


# ----------------------------------------------------------------------------
# One-time weight preparation (trace-time reorder / algebraic collapse).
# ----------------------------------------------------------------------------
def _prepare_weights(params):
    hp = jax.lax.Precision.HIGHEST
    # fc1 -> dropout(eval) -> fc2 is purely linear: collapse into one (760, C)
    # map, then fold torch's filter-major cat.view(B, -1) ordering into its
    # layout so the kernel never has to transpose/flatten activations.
    w_fc = jnp.dot(params["fc1_w"].T, params["fc2_w"].T, precision=hp)       # (760, C)
    b_fc = (jnp.dot(params["fc1_b"], params["fc2_w"].T, precision=hp)
            + params["fc2_b"])[None, :]                                      # (1, C)
    w_fc = w_fc.reshape(N_FILTERS, P_TOT, N_CLASSES).transpose(2, 1, 0)      # (C, P_TOT, F)
    return {
        "table": params["embedding"],                                        # (V, E)
        "w1": jnp.transpose(params["conv_w"][0], (1, 2, 0)),                 # (fs0, E, F)
        "b1": params["conv_b"][0][None, :],                                  # (1, F)
        "w2": jnp.transpose(params["conv_w"][1], (1, 2, 0)),                 # (fs1, E, F)
        "b2": params["conv_b"][1][None, :],                                  # (1, F)
        "w_fc": w_fc,
        "b_fc": b_fc,
    }


# ----------------------------------------------------------------------------
# Wrapper: single fused pallas_call.
# ----------------------------------------------------------------------------
def cnn_forward(params, text, text_lengths):
    del text_lengths  # unused by the reference forward as well

    # Tiny, one-time weight prep (would be hoisted out of the serving path).
    prep = _prepare_weights(params)
    ids = text.astype(jnp.int32)[..., None]                                  # (B, L, 1)

    out = pl.pallas_call(
        fused_cnn_kernel,
        out_shape=jax.ShapeDtypeStruct((BATCH, 1, N_CLASSES), jnp.float32),
        grid=(BATCH,),
        in_specs=[
            pl.BlockSpec((None, SEQ_LEN, 1), lambda b: (b, 0, 0)),           # ids
            pl.BlockSpec((VOCAB, EMBED), lambda b: (0, 0)),                  # table
            pl.BlockSpec((FILTER_SIZES[0], EMBED, N_FILTERS), lambda b: (0, 0, 0)),
            pl.BlockSpec((1, N_FILTERS), lambda b: (0, 0)),
            pl.BlockSpec((FILTER_SIZES[1], EMBED, N_FILTERS), lambda b: (0, 0, 0)),
            pl.BlockSpec((1, N_FILTERS), lambda b: (0, 0)),
            pl.BlockSpec((N_CLASSES, P_TOT, N_FILTERS), lambda b: (0, 0, 0)),
            pl.BlockSpec((1, N_CLASSES), lambda b: (0, 0)),
        ],
        out_specs=pl.BlockSpec((None, 1, N_CLASSES), lambda b: (b, 0, 0)),
        scratch_shapes=[
            pltpu.VMEM((SEQ_LEN, EMBED), jnp.float32),      # embedded sequence
            pltpu.VMEM((LOUT[0], N_FILTERS), jnp.float32),  # conv output (reused)
        ],
        compiler_params=pltpu.CompilerParams(dimension_semantics=("parallel",)),
    )(ids, prep["table"], prep["w1"], prep["b1"], prep["w2"], prep["b2"],
      prep["w_fc"], prep["b_fc"])
    return out.reshape(BATCH, N_CLASSES)


# ----------------------------------------------------------------------------
# Deterministic parameter init (shapes per the module's __init__).
# ----------------------------------------------------------------------------
def init_params(key):
    ks = jax.random.split(key, 8)
    return {
        "embedding": jax.random.normal(ks[0], (VOCAB, EMBED), jnp.float32) * 0.1,
        "conv_w": [
            jax.random.normal(ks[1], (N_FILTERS, FILTER_SIZES[0], EMBED), jnp.float32) * 0.1,
            jax.random.normal(ks[2], (N_FILTERS, FILTER_SIZES[1], EMBED), jnp.float32) * 0.1,
        ],
        "conv_b": [
            jax.random.normal(ks[3], (N_FILTERS,), jnp.float32) * 0.1,
            jax.random.normal(ks[4], (N_FILTERS,), jnp.float32) * 0.1,
        ],
        "fc1_w": jax.random.normal(ks[5], (HIDDEN, 95 * N_FILTERS), jnp.float32) * 0.05,
        "fc1_b": jax.random.normal(ks[6], (HIDDEN,), jnp.float32) * 0.05,
        "fc2_w": jax.random.normal(ks[7], (N_CLASSES, HIDDEN), jnp.float32) * 0.05,
        "fc2_b": jnp.zeros((N_CLASSES,), jnp.float32),
    }


# ----------------------------------------------------------------------------
# Pure-JAX reference (mirrors the PyTorch forward, un-collapsed) for checking.
# ----------------------------------------------------------------------------
def reference_forward(params, text):
    hp = jax.lax.Precision.HIGHEST
    emb = params["embedding"][text]                                  # (B, L, E)
    pooled_all = []
    for i, fs in enumerate(FILTER_SIZES):
        lout = SEQ_LEN - fs + 1
        windows = jnp.stack([emb[:, k:k + lout, :] for k in range(fs)], axis=2)  # (B,lout,fs,E)
        conv = jnp.einsum("blke,fke->bfl", windows, params["conv_w"][i],
                          precision=hp) + params["conv_b"][i][None, :, None]
        p = lout // POOL
        pooled = conv[:, :, :p * POOL].reshape(BATCH, N_FILTERS, p, POOL).max(axis=-1)
        pooled_all.append(pooled)
    cat = jnp.concatenate(pooled_all, axis=2)                        # (B, F, 95)
    x = jnp.maximum(cat.reshape(BATCH, -1), 0.0)
    h = jnp.dot(x, params["fc1_w"].T, precision=hp) + params["fc1_b"]
    return jnp.dot(h, params["fc2_w"].T, precision=hp) + params["fc2_b"]


if __name__ == "__main__":
    key = jax.random.PRNGKey(0)
    pkey, tkey = jax.random.split(key)
    params = init_params(pkey)
    text = jax.random.randint(tkey, (BATCH, SEQ_LEN), 0, VOCAB, dtype=jnp.int32)
    text_lengths = jnp.full((BATCH,), SEQ_LEN, dtype=jnp.int32)

    out = cnn_forward(params, text, text_lengths)
    out = jax.block_until_ready(out)

    ref = reference_forward(params, text)
    np.testing.assert_allclose(np.asarray(out), np.asarray(ref), rtol=1e-3, atol=1e-3)
    print("KERNEL_OK")
</pallas_src>

<mosaic_0001>
module attributes {stable_mosaic.version = 11 : i64} {
  func.func @fused_cnn_kernel(%arg0: i32, %arg1: memref<1x100x1xi32, #tpu.memory_space<vmem>>, %arg2: memref<50x32xf32, #tpu.memory_space<vmem>>, %arg3: memref<5x32x8xf32, #tpu.memory_space<vmem>>, %arg4: memref<1x8xf32, #tpu.memory_space<vmem>>, %arg5: memref<7x32x8xf32, #tpu.memory_space<vmem>>, %arg6: memref<1x8xf32, #tpu.memory_space<vmem>>, %arg7: memref<2x95x8xf32, #tpu.memory_space<vmem>>, %arg8: memref<1x2xf32, #tpu.memory_space<vmem>>, %arg9: memref<1x1x2xf32, #tpu.memory_space<vmem>>, %arg10: memref<100x32xf32, #tpu.memory_space<vmem>>, %arg11: memref<96x8xf32, #tpu.memory_space<vmem>>) attributes {dimension_semantics = [#tpu.dimension_semantics<parallel>], iteration_bounds = array<i64: 2>, scalar_prefetch = 0 : i64, scratch_operands = 2 : i64, tpu.core_type = #tpu.core_type<tc>, window_params = [{transform_indices = @transform_0, window_bounds = array<i64: 1, 100, 1>}, {pipeline_mode = #tpu.pipeline_mode<synchronous>, transform_indices = @transform_1, window_bounds = array<i64: 50, 32>}, {pipeline_mode = #tpu.pipeline_mode<synchronous>, transform_indices = @transform_2, window_bounds = array<i64: 5, 32, 8>}, {pipeline_mode = #tpu.pipeline_mode<synchronous>, transform_indices = @transform_3, window_bounds = array<i64: 1, 8>}, {pipeline_mode = #tpu.pipeline_mode<synchronous>, transform_indices = @transform_4, window_bounds = array<i64: 7, 32, 8>}, {pipeline_mode = #tpu.pipeline_mode<synchronous>, transform_indices = @transform_5, window_bounds = array<i64: 1, 8>}, {pipeline_mode = #tpu.pipeline_mode<synchronous>, transform_indices = @transform_6, window_bounds = array<i64: 2, 95, 8>}, {pipeline_mode = #tpu.pipeline_mode<synchronous>, transform_indices = @transform_7, window_bounds = array<i64: 1, 2>}, {transform_indices = @transform_8, window_bounds = array<i64: 1, 1, 2>}]} {
    %c0 = arith.constant 0 : index
    %c0_0 = arith.constant 0 : index
    %c0_1 = arith.constant 0 : index
    %0 = vector.load %arg1[%c0, %c0_0, %c0_1] : memref<1x100x1xi32, #tpu.memory_space<vmem>>, vector<1x100x1xi32>
    %1 = vector.shape_cast %0 : vector<1x100x1xi32> to vector<100x1xi32>
    %2 = tpu.iota {dimensions = array<i32: 1>} : vector<100x50xi32>
    %3 = vector.broadcast %1 : vector<100x1xi32> to vector<100x50xi32>
    %4 = arith.cmpi eq, %3, %2 : vector<100x50xi32>
    %5 = arith.extui %4 : vector<100x50xi1> to vector<100x50xi32>
    %6 = arith.sitofp %5 : vector<100x50xi32> to vector<100x50xf32>
    %c0_2 = arith.constant 0 : index
    %c0_3 = arith.constant 0 : index
    %7 = vector.load %arg2[%c0_2, %c0_3] : memref<50x32xf32, #tpu.memory_space<vmem>>, vector<50x32xf32>
    %cst = arith.constant dense<0.000000e+00> : vector<100x32xf32>
    %8 = tpu.matmul %6, %7, %cst {dimension_numbers = #tpu.dot_dimension_numbers<[1], [0], [0], [1], [0, 0, 1, 1], [], []>} : vector<100x50xf32>, vector<50x32xf32>, vector<100x32xf32> -> vector<100x32xf32>
    %c0_4 = arith.constant 0 : index
    %c0_5 = arith.constant 0 : index
    %9 = vector.load %arg10[%c0_4, %c0_5] : memref<100x32xf32, #tpu.memory_space<vmem>>, vector<100x32xf32>
    tpu.vector_store %arg10[%c0_4, %c0_5], %8 {strides = array<i32>} : memref<100x32xf32, #tpu.memory_space<vmem>>, vector<100x32xf32>,
    %c0_6 = arith.constant 0 : index
    %c0_7 = arith.constant 0 : index
    %c0_8 = arith.constant 0 : index
    %10 = vector.load %arg3[%c0_6, %c0_7, %c0_8] : memref<5x32x8xf32, #tpu.memory_space<vmem>>, vector<5x32x8xf32>
    %cst_9 = arith.constant 0.000000e+00 : f32
    %11 = vector.broadcast %cst_9 : f32 to vector<96x8xf32>
    %c0_10 = arith.constant 0 : index
    %c0_11 = arith.constant 0 : index
    %12 = vector.load %arg10[%c0_10, %c0_11] : memref<100x32xf32, #tpu.memory_space<vmem>>, vector<96x32xf32>
    %13 = vector.extract_strided_slice %10 {offsets = [0, 0, 0], sizes = [1, 32, 8], strides = [1, 1, 1]} : vector<5x32x8xf32> to vector<1x32x8xf32>
    %14 = vector.shape_cast %13 : vector<1x32x8xf32> to vector<32x8xf32>
    %cst_12 = arith.constant dense<0.000000e+00> : vector<96x8xf32>
    %15 = tpu.matmul %12, %14, %cst_12 {dimension_numbers = #tpu.dot_dimension_numbers<[1], [0], [0], [1], [0, 0, 1, 1], [], []>} : vector<96x32xf32>, vector<32x8xf32>, vector<96x8xf32> -> vector<96x8xf32>
    %16 = arith.addf %11, %15 : vector<96x8xf32>
    %c1 = arith.constant 1 : index
    %c0_13 = arith.constant 0 : index
    %17 = vector.load %arg10[%c1, %c0_13] : memref<100x32xf32, #tpu.memory_space<vmem>>, vector<96x32xf32>
    %18 = vector.extract_strided_slice %10 {offsets = [1, 0, 0], sizes = [1, 32, 8], strides = [1, 1, 1]} : vector<5x32x8xf32> to vector<1x32x8xf32>
    %19 = vector.shape_cast %18 : vector<1x32x8xf32> to vector<32x8xf32>
    %cst_14 = arith.constant dense<0.000000e+00> : vector<96x8xf32>
    %20 = tpu.matmul %17, %19, %cst_14 {dimension_numbers = #tpu.dot_dimension_numbers<[1], [0], [0], [1], [0, 0, 1, 1], [], []>} : vector<96x32xf32>, vector<32x8xf32>, vector<96x8xf32> -> vector<96x8xf32>
    %21 = arith.addf %16, %20 : vector<96x8xf32>
    %c2 = arith.constant 2 : index
    %c0_15 = arith.constant 0 : index
    %22 = vector.load %arg10[%c2, %c0_15] : memref<100x32xf32, #tpu.memory_space<vmem>>, vector<96x32xf32>
    %23 = vector.extract_strided_slice %10 {offsets = [2, 0, 0], sizes = [1, 32, 8], strides = [1, 1, 1]} : vector<5x32x8xf32> to vector<1x32x8xf32>
    %24 = vector.shape_cast %23 : vector<1x32x8xf32> to vector<32x8xf32>
    %cst_16 = arith.constant dense<0.000000e+00> : vector<96x8xf32>
    %25 = tpu.matmul %22, %24, %cst_16 {dimension_numbers = #tpu.dot_dimension_numbers<[1], [0], [0], [1], [0, 0, 1, 1], [], []>} : vector<96x32xf32>, vector<32x8xf32>, vector<96x8xf32> -> vector<96x8xf32>
    %26 = arith.addf %21, %25 : vector<96x8xf32>
    %c3 = arith.constant 3 : index
    %c0_17 = arith.constant 0 : index
    %27 = vector.load %arg10[%c3, %c0_17] : memref<100x32xf32, #tpu.memory_space<vmem>>, vector<96x32xf32>
    %28 = vector.extract_strided_slice %10 {offsets = [3, 0, 0], sizes = [1, 32, 8], strides = [1, 1, 1]} : vector<5x32x8xf32> to vector<1x32x8xf32>
    %29 = vector.shape_cast %28 : vector<1x32x8xf32> to vector<32x8xf32>
    %cst_18 = arith.constant dense<0.000000e+00> : vector<96x8xf32>
    %30 = tpu.matmul %27, %29, %cst_18 {dimension_numbers = #tpu.dot_dimension_numbers<[1], [0], [0], [1], [0, 0, 1, 1], [], []>} : vector<96x32xf32>, vector<32x8xf32>, vector<96x8xf32> -> vector<96x8xf32>
    %31 = arith.addf %26, %30 : vector<96x8xf32>
    %c4 = arith.constant 4 : index
    %c0_19 = arith.constant 0 : index
    %32 = vector.load %arg10[%c4, %c0_19] : memref<100x32xf32, #tpu.memory_space<vmem>>, vector<96x32xf32>
    %33 = vector.extract_strided_slice %10 {offsets = [4, 0, 0], sizes = [1, 32, 8], strides = [1, 1, 1]} : vector<5x32x8xf32> to vector<1x32x8xf32>
    %34 = vector.shape_cast %33 : vector<1x32x8xf32> to vector<32x8xf32>
    %cst_20 = arith.constant dense<0.000000e+00> : vector<96x8xf32>
    %35 = tpu.matmul %32, %34, %cst_20 {dimension_numbers = #tpu.dot_dimension_numbers<[1], [0], [0], [1], [0, 0, 1, 1], [], []>} : vector<96x32xf32>, vector<32x8xf32>, vector<96x8xf32> -> vector<96x8xf32>
    %36 = arith.addf %31, %35 : vector<96x8xf32>
    %c0_21 = arith.constant 0 : index
    %c0_22 = arith.constant 0 : index
    %37 = vector.load %arg4[%c0_21, %c0_22] : memref<1x8xf32, #tpu.memory_space<vmem>>, vector<1x8xf32>
    %38 = vector.broadcast %37 : vector<1x8xf32> to vector<96x8xf32>
    %39 = arith.addf %36, %38 : vector<96x8xf32>
    %c0_23 = arith.constant 0 : index
    %c0_24 = arith.constant 0 : index
    %40 = vector.load %arg11[%c0_23, %c0_24] : memref<96x8xf32, #tpu.memory_space<vmem>>, vector<96x8xf32>
    tpu.vector_store %arg11[%c0_23, %c0_24], %39 {strides = array<i32>} : memref<96x8xf32, #tpu.memory_space<vmem>>, vector<96x8xf32>,
    %c0_25 = arith.constant 0 : index
    %c0_26 = arith.constant 0 : index
    %41 = tpu.strided_load %arg11[%c0_25, %c0_26] {strides = array<i32: 2, 1>} : memref<96x8xf32, #tpu.memory_space<vmem>>, vector<48x8xf32>
    %c1_27 = arith.constant 1 : index
    %c0_28 = arith.constant 0 : index
    %42 = tpu.strided_load %arg11[%c1_27, %c0_28] {strides = array<i32: 2, 1>} : memref<96x8xf32, #tpu.memory_space<vmem>>, vector<48x8xf32>
    %43 = arith.maximumf %41, %42 : vector<48x8xf32>
    %cst_29 = arith.constant 0.000000e+00 : f32
    %44 = vector.broadcast %cst_29 : f32 to vector<48x8xf32>
    %45 = arith.maximumf %43, %44 : vector<48x8xf32>
    %c0_30 = arith.constant 0 : index
    %c0_31 = arith.constant 0 : index
    %c0_32 = arith.constant 0 : index
    %46 = vector.load %arg5[%c0_30, %c0_31, %c0_32] : memref<7x32x8xf32, #tpu.memory_space<vmem>>, vector<7x32x8xf32>
    %cst_33 = arith.constant 0.000000e+00 : f32
    %47 = vector.broadcast %cst_33 : f32 to vector<94x8xf32>
    %c0_34 = arith.constant 0 : index
    %c0_35 = arith.constant 0 : index
    %48 = vector.load %arg10[%c0_34, %c0_35] : memref<100x32xf32, #tpu.memory_space<vmem>>, vector<94x32xf32>
    %49 = vector.extract_strided_slice %46 {offsets = [0, 0, 0], sizes = [1, 32, 8], strides = [1, 1, 1]} : vector<7x32x8xf32> to vector<1x32x8xf32>
    %50 = vector.shape_cast %49 : vector<1x32x8xf32> to vector<32x8xf32>
    %cst_36 = arith.constant dense<0.000000e+00> : vector<94x8xf32>
    %51 = tpu.matmul %48, %50, %cst_36 {dimension_numbers = #tpu.dot_dimension_numbers<[1], [0], [0], [1], [0, 0, 1, 1], [], []>} : vector<94x32xf32>, vector<32x8xf32>, vector<94x8xf32> -> vector<94x8xf32>
    %52 = arith.addf %47, %51 : vector<94x8xf32>
    %c1_37 = arith.constant 1 : index
    %c0_38 = arith.constant 0 : index
    %53 = vector.load %arg10[%c1_37, %c0_38] : memref<100x32xf32, #tpu.memory_space<vmem>>, vector<94x32xf32>
    %54 = vector.extract_strided_slice %46 {offsets = [1, 0, 0], sizes = [1, 32, 8], strides = [1, 1, 1]} : vector<7x32x8xf32> to vector<1x32x8xf32>
    %55 = vector.shape_cast %54 : vector<1x32x8xf32> to vector<32x8xf32>
    %cst_39 = arith.constant dense<0.000000e+00> : vector<94x8xf32>
    %56 = tpu.matmul %53, %55, %cst_39 {dimension_numbers = #tpu.dot_dimension_numbers<[1], [0], [0], [1], [0, 0, 1, 1], [], []>} : vector<94x32xf32>, vector<32x8xf32>, vector<94x8xf32> -> vector<94x8xf32>
    %57 = arith.addf %52, %56 : vector<94x8xf32>
    %c2_40 = arith.constant 2 : index
    %c0_41 = arith.constant 0 : index
    %58 = vector.load %arg10[%c2_40, %c0_41] : memref<100x32xf32, #tpu.memory_space<vmem>>, vector<94x32xf32>
    %59 = vector.extract_strided_slice %46 {offsets = [2, 0, 0], sizes = [1, 32, 8], strides = [1, 1, 1]} : vector<7x32x8xf32> to vector<1x32x8xf32>
    %60 = vector.shape_cast %59 : vector<1x32x8xf32> to vector<32x8xf32>
    %cst_42 = arith.constant dense<0.000000e+00> : vector<94x8xf32>
    %61 = tpu.matmul %58, %60, %cst_42 {dimension_numbers = #tpu.dot_dimension_numbers<[1], [0], [0], [1], [0, 0, 1, 1], [], []>} : vector<94x32xf32>, vector<32x8xf32>, vector<94x8xf32> -> vector<94x8xf32>
    %62 = arith.addf %57, %61 : vector<94x8xf32>
    %c3_43 = arith.constant 3 : index
    %c0_44 = arith.constant 0 : index
    %63 = vector.load %arg10[%c3_43, %c0_44] : memref<100x32xf32, #tpu.memory_space<vmem>>, vector<94x32xf32>
    %64 = vector.extract_strided_slice %46 {offsets = [3, 0, 0], sizes = [1, 32, 8], strides = [1, 1, 1]} : vector<7x32x8xf32> to vector<1x32x8xf32>
    %65 = vector.shape_cast %64 : vector<1x32x8xf32> to vector<32x8xf32>
    %cst_45 = arith.constant dense<0.000000e+00> : vector<94x8xf32>
    %66 = tpu.matmul %63, %65, %cst_45 {dimension_numbers = #tpu.dot_dimension_numbers<[1], [0], [0], [1], [0, 0, 1, 1], [], []>} : vector<94x32xf32>, vector<32x8xf32>, vector<94x8xf32> -> vector<94x8xf32>
    %67 = arith.addf %62, %66 : vector<94x8xf32>
    %c4_46 = arith.constant 4 : index
    %c0_47 = arith.constant 0 : index
    %68 = vector.load %arg10[%c4_46, %c0_47] : memref<100x32xf32, #tpu.memory_space<vmem>>, vector<94x32xf32>
    %69 = vector.extract_strided_slice %46 {offsets = [4, 0, 0], sizes = [1, 32, 8], strides = [1, 1, 1]} : vector<7x32x8xf32> to vector<1x32x8xf32>
    %70 = vector.shape_cast %69 : vector<1x32x8xf32> to vector<32x8xf32>
    %cst_48 = arith.constant dense<0.000000e+00> : vector<94x8xf32>
    %71 = tpu.matmul %68, %70, %cst_48 {dimension_numbers = #tpu.dot_dimension_numbers<[1], [0], [0], [1], [0, 0, 1, 1], [], []>} : vector<94x32xf32>, vector<32x8xf32>, vector<94x8xf32> -> vector<94x8xf32>
    %72 = arith.addf %67, %71 : vector<94x8xf32>
    %c5 = arith.constant 5 : index
    %c0_49 = arith.constant 0 : index
    %73 = vector.load %arg10[%c5, %c0_49] : memref<100x32xf32, #tpu.memory_space<vmem>>, vector<94x32xf32>
    %74 = vector.extract_strided_slice %46 {offsets = [5, 0, 0], sizes = [1, 32, 8], strides = [1, 1, 1]} : vector<7x32x8xf32> to vector<1x32x8xf32>
    %75 = vector.shape_cast %74 : vector<1x32x8xf32> to vector<32x8xf32>
    %cst_50 = arith.constant dense<0.000000e+00> : vector<94x8xf32>
    %76 = tpu.matmul %73, %75, %cst_50 {dimension_numbers = #tpu.dot_dimension_numbers<[1], [0], [0], [1], [0, 0, 1, 1], [], []>} : vector<94x32xf32>, vector<32x8xf32>, vector<94x8xf32> -> vector<94x8xf32>
    %77 = arith.addf %72, %76 : vector<94x8xf32>
    %c6 = arith.constant 6 : index
    %c0_51 = arith.constant 0 : index
    %78 = vector.load %arg10[%c6, %c0_51] : memref<100x32xf32, #tpu.memory_space<vmem>>, vector<94x32xf32>
    %79 = vector.extract_strided_slice %46 {offsets = [6, 0, 0], sizes = [1, 32, 8], strides = [1, 1, 1]} : vector<7x32x8xf32> to vector<1x32x8xf32>
    %80 = vector.shape_cast %79 : vector<1x32x8xf32> to vector<32x8xf32>
    %cst_52 = arith.constant dense<0.000000e+00> : vector<94x8xf32>
    %81 = tpu.matmul %78, %80, %cst_52 {dimension_numbers = #tpu.dot_dimension_numbers<[1], [0], [0], [1], [0, 0, 1, 1], [], []>} : vector<94x32xf32>, vector<32x8xf32>, vector<94x8xf32> -> vector<94x8xf32>
    %82 = arith.addf %77, %81 : vector<94x8xf32>
    %c0_53 = arith.constant 0 : index
    %c0_54 = arith.constant 0 : index
    %83 = vector.load %arg6[%c0_53, %c0_54] : memref<1x8xf32, #tpu.memory_space<vmem>>, vector<1x8xf32>
    %84 = vector.broadcast %83 : vector<1x8xf32> to vector<94x8xf32>
    %85 = arith.addf %82, %84 : vector<94x8xf32>
    %c0_55 = arith.constant 0 : index
    %c0_56 = arith.constant 0 : index
    %86 = vector.load %arg11[%c0_55, %c0_56] : memref<96x8xf32, #tpu.memory_space<vmem>>, vector<94x8xf32>
    tpu.vector_store %arg11[%c0_55, %c0_56], %85 {strides = array<i32>} : memref<96x8xf32, #tpu.memory_space<vmem>>, vector<94x8xf32>,
    %c0_57 = arith.constant 0 : index
    %c0_58 = arith.constant 0 : index
    %87 = tpu.strided_load %arg11[%c0_57, %c0_58] {strides = array<i32: 2, 1>} : memref<96x8xf32, #tpu.memory_space<vmem>>, vector<47x8xf32>
    %c1_59 = arith.constant 1 : index
    %c0_60 = arith.constant 0 : index
    %88 = tpu.strided_load %arg11[%c1_59, %c0_60] {strides = array<i32: 2, 1>} : memref<96x8xf32, #tpu.memory_space<vmem>>, vector<47x8xf32>
    %89 = arith.maximumf %87, %88 : vector<47x8xf32>
    %cst_61 = arith.constant 0.000000e+00 : f32
    %90 = vector.broadcast %cst_61 : f32 to vector<47x8xf32>
    %91 = arith.maximumf %89, %90 : vector<47x8xf32>
    %c0_62 = arith.constant 0 : index
    %c0_63 = arith.constant 0 : index
    %c0_64 = arith.constant 0 : index
    %92 = vector.load %arg7[%c0_62, %c0_63, %c0_64] : memref<2x95x8xf32, #tpu.memory_space<vmem>>, vector<1x48x8xf32>
    %93 = vector.shape_cast %92 : vector<1x48x8xf32> to vector<48x8xf32>
    %94 = arith.mulf %45, %93 : vector<48x8xf32>
    %cst_65 = arith.constant dense<0.000000e+00> : vector<8xf32>
    %95 = vector.multi_reduction <add>, %94, %cst_65 [0] : vector<48x8xf32> to vector<8xf32>
    %96 = vector.shape_cast %95 : vector<8xf32> to vector<1x8xf32>
    %cst_66 = arith.constant dense<0.000000e+00> : vector<1xf32>
    %97 = vector.multi_reduction <add>, %96, %cst_66 [1] : vector<1x8xf32> to vector<1xf32>
    %98 = vector.shape_cast %97 : vector<1xf32> to vector<1x1xf32>
    %c0_67 = arith.constant 0 : index
    %c48 = arith.constant 48 : index
    %c0_68 = arith.constant 0 : index
    %99 = vector.load %arg7[%c0_67, %c48, %c0_68] : memref<2x95x8xf32, #tpu.memory_space<vmem>>, vector<1x47x8xf32>
    %100 = vector.shape_cast %99 : vector<1x47x8xf32> to vector<47x8xf32>
    %101 = arith.mulf %91, %100 : vector<47x8xf32>
    %cst_69 = arith.constant dense<0.000000e+00> : vector<8xf32>
    %102 = vector.multi_reduction <add>, %101, %cst_69 [0] : vector<47x8xf32> to vector<8xf32>
    %103 = vector.shape_cast %102 : vector<8xf32> to vector<1x8xf32>
    %cst_70 = arith.constant dense<0.000000e+00> : vector<1xf32>
    %104 = vector.multi_reduction <add>, %103, %cst_70 [1] : vector<1x8xf32> to vector<1xf32>
    %105 = vector.shape_cast %104 : vector<1xf32> to vector<1x1xf32>
    %106 = arith.addf %98, %105 : vector<1x1xf32>
    %c0_71 = arith.constant 0 : index
    %c0_72 = arith.constant 0 : index
    %107 = vector.load %arg8[%c0_71, %c0_72] : memref<1x2xf32, #tpu.memory_space<vmem>>, vector<1x1xf32>
    %108 = arith.addf %106, %107 : vector<1x1xf32>
    %c0_73 = arith.constant 0 : index
    %c0_74 = arith.constant 0 : index
    %c0_75 = arith.constant 0 : index
    %109 = vector.load %arg9[%c0_73, %c0_74, %c0_75] : memref<1x1x2xf32, #tpu.memory_space<vmem>>, vector<1x1x1xf32>
    %110 = vector.shape_cast %109 : vector<1x1x1xf32> to vector<1x1xf32>
    %111 = vector.shape_cast %108 : vector<1x1xf32> to vector<1x1x1xf32>
    tpu.vector_store %arg9[%c0_73, %c0_74, %c0_75], %111 {strides = array<i32>} : memref<1x1x2xf32, #tpu.memory_space<vmem>>, vector<1x1x1xf32>,
    %c1_76 = arith.constant 1 : index
    %c0_77 = arith.constant 0 : index
    %c0_78 = arith.constant 0 : index
    %112 = vector.load %arg7[%c1_76, %c0_77, %c0_78] : memref<2x95x8xf32, #tpu.memory_space<vmem>>, vector<1x48x8xf32>
    %113 = vector.shape_cast %112 : vector<1x48x8xf32> to vector<48x8xf32>
    %114 = arith.mulf %45, %113 : vector<48x8xf32>
    %cst_79 = arith.constant dense<0.000000e+00> : vector<8xf32>
    %115 = vector.multi_reduction <add>, %114, %cst_79 [0] : vector<48x8xf32> to vector<8xf32>
    %116 = vector.shape_cast %115 : vector<8xf32> to vector<1x8xf32>
    %cst_80 = arith.constant dense<0.000000e+00> : vector<1xf32>
    %117 = vector.multi_reduction <add>, %116, %cst_80 [1] : vector<1x8xf32> to vector<1xf32>
    %118 = vector.shape_cast %117 : vector<1xf32> to vector<1x1xf32>
    %c1_81 = arith.constant 1 : index
    %c48_82 = arith.constant 48 : index
    %c0_83 = arith.constant 0 : index
    %119 = vector.load %arg7[%c1_81, %c48_82, %c0_83] : memref<2x95x8xf32, #tpu.memory_space<vmem>>, vector<1x47x8xf32>
    %120 = vector.shape_cast %119 : vector<1x47x8xf32> to vector<47x8xf32>
    %121 = arith.mulf %91, %120 : vector<47x8xf32>
    %cst_84 = arith.constant dense<0.000000e+00> : vector<8xf32>
    %122 = vector.multi_reduction <add>, %121, %cst_84 [0] : vector<47x8xf32> to vector<8xf32>
    %123 = vector.shape_cast %122 : vector<8xf32> to vector<1x8xf32>
    %cst_85 = arith.constant dense<0.000000e+00> : vector<1xf32>
    %124 = vector.multi_reduction <add>, %123, %cst_85 [1] : vector<1x8xf32> to vector<1xf32>
    %125 = vector.shape_cast %124 : vector<1xf32> to vector<1x1xf32>
    %126 = arith.addf %118, %125 : vector<1x1xf32>
    %c0_86 = arith.constant 0 : index
    %c1_87 = arith.constant 1 : index
    %127 = vector.load %arg8[%c0_86, %c1_87] : memref<1x2xf32, #tpu.memory_space<vmem>>, vector<1x1xf32>
    %128 = arith.addf %126, %127 : vector<1x1xf32>
    %c0_88 = arith.constant 0 : index
    %c0_89 = arith.constant 0 : index
    %c1_90 = arith.constant 1 : index
    %129 = vector.load %arg9[%c0_88, %c0_89, %c1_90] : memref<1x1x2xf32, #tpu.memory_space<vmem>>, vector<1x1x1xf32>
    %130 = vector.shape_cast %129 : vector<1x1x1xf32> to vector<1x1xf32>
    %131 = vector.shape_cast %128 : vector<1x1xf32> to vector<1x1x1xf32>
    tpu.vector_store %arg9[%c0_88, %c0_89, %c1_90], %131 {strides = array<i32>} : memref<1x1x2xf32, #tpu.memory_space<vmem>>, vector<1x1x1xf32>,
    return
  }
  func.func @transform_0(%arg0: i32) -> (i32, i32, i32) {
    %c0_i32 = arith.constant 0 : i32
    %c0_i32_0 = arith.constant 0 : i32
    %c0_i32_1 = arith.constant 0 : i32
    return %arg0, %c0_i32, %c0_i32_0 : i32, i32, i32
  }
  func.func @transform_1(%arg0: i32) -> (i32, i32) {
    %c0_i32 = arith.constant 0 : i32
    %c0_i32_0 = arith.constant 0 : i32
    %c0_i32_1 = arith.constant 0 : i32
    return %c0_i32, %c0_i32_0 : i32, i32
  }
  func.func @transform_2(%arg0: i32) -> (i32, i32, i32) {
    %c0_i32 = arith.constant 0 : i32
    %c0_i32_0 = arith.constant 0 : i32
    %c0_i32_1 = arith.constant 0 : i32
    %c0_i32_2 = arith.constant 0 : i32
    return %c0_i32, %c0_i32_0, %c0_i32_1 : i32, i32, i32
  }
  func.func @transform_3(%arg0: i32) -> (i32, i32) {
    %c0_i32 = arith.constant 0 : i32
    %c0_i32_0 = arith.constant 0 : i32
    %c0_i32_1 = arith.constant 0 : i32
    return %c0_i32, %c0_i32_0 : i32, i32
  }
  func.func @transform_4(%arg0: i32) -> (i32, i32, i32) {
    %c0_i32 = arith.constant 0 : i32
    %c0_i32_0 = arith.constant 0 : i32
    %c0_i32_1 = arith.constant 0 : i32
    %c0_i32_2 = arith.constant 0 : i32
    return %c0_i32, %c0_i32_0, %c0_i32_1 : i32, i32, i32
  }
  func.func @transform_5(%arg0: i32) -> (i32, i32) {
    %c0_i32 = arith.constant 0 : i32
    %c0_i32_0 = arith.constant 0 : i32
    %c0_i32_1 = arith.constant 0 : i32
    return %c0_i32, %c0_i32_0 : i32, i32
  }
  func.func @transform_6(%arg0: i32) -> (i32, i32, i32) {
    %c0_i32 = arith.constant 0 : i32
    %c0_i32_0 = arith.constant 0 : i32
    %c0_i32_1 = arith.constant 0 : i32
    %c0_i32_2 = arith.constant 0 : i32
    return %c0_i32, %c0_i32_0, %c0_i32_1 : i32, i32, i32
  }
  func.func @transform_7(%arg0: i32) -> (i32, i32) {
    %c0_i32 = arith.constant 0 : i32
    %c0_i32_0 = arith.constant 0 : i32
    %c0_i32_1 = arith.constant 0 : i32
    return %c0_i32, %c0_i32_0 : i32, i32
  }
  func.func @transform_8(%arg0: i32) -> (i32, i32, i32) {
    %c0_i32 = arith.constant 0 : i32
    %c0_i32_0 = arith.constant 0 : i32
    %c0_i32_1 = arith.constant 0 : i32
    return %arg0, %c0_i32, %c0_i32_0 : i32, i32, i32
  }
}

</mosaic_0001>

<bundles_post_ra>
// kernel: tpu_custom_call.1
= control target key start
LH: loop header
LB: loop body
LE: loop exit
PB: predicated region body
PF: predicated region fallthrough
CT: control target
= control target key end

     0   :  { %13 = vsyncpa [#allocation5], 0  ;;  %s4982_s0 = inlined_call_operand.vmem [shape: s32[2,100,1], index: 0, kind: input, shape index: {}]   ;;  %s4983_s1 = inlined_call_operand.vmem [shape: f32[50,32], index: 1, kind: input, shape index: {}]   ;;  %s4984_s2 = inlined_call_operand.vmem [shape: f32[5,32,8], index: 2, kind: input, shape index: {}]   ;;  %s4985_s3 = inlined_call_operand.vmem [shape: f32[1,8], index: 3, kind: input, shape index: {}]   ;;  %s4986_s4 = inlined_call_operand.vmem [shape: f32[7,32,8], index: 4, kind: input, shape index: {}]   ;;  %s4987_s5 = inlined_call_operand.vmem [shape: f32[1,8], index: 5, kind: input, shape index: {}]   ;;  %s4988_s6 = inlined_call_operand.vmem [shape: f32[2,95,8], index: 6, kind: input, shape index: {}]   ;;  %s4989_s7 = inlined_call_operand.vmem [shape: f32[1,2], index: 7, kind: input, shape index: {}]   ;;  %s4990_s8 = inlined_call_operand.hbm [shape: f32[2,1,2], index: 8, kind: output, shape index: {}]  }
   0x1   :  { %15 = vsyncpa [#allocation5 + $0x1], 0  ;;  %s4298_s27 = smov 0   ;;  %s4300_s28 = smov 0  }
   0x2   :  { %s4302_s29 = smov 0   ;;  %s4304_s30 = smov 0  }
   0x3 LB: > { %s4319_s9 = sadd.s32 4294967295, %s4246_s30   ;;  %s3143_s10 = sadd.s32 4294967294, %s4246_s30   ;;  %s4246_s30 = sphi %s4304_s30, %s4996_s30   ;;  %s4242_s29 = sphi %s4302_s29, %s4995_s29   ;;  %s4238_s28 = sphi %s4300_s28, %s4994_s28   ;;  %s4234_s27 = sphi %s4298_s27, %s4993_s27  }
   0x4   : > { %s4323_s11 = sadd.s32 1, %s4246_s30   ;;  %s201_s12 = sadd.s32 1, %s4242_s29 }
   0x5   : > { %s198_s13 = ssub.s32 %s4246_s30, %s4323_s11  ;;  %p211_p0 = scmp.ne.s32.totalorder %s4242_s29, %s4238_s28 }
   0x6   : > { %p199_p1 = scmp.eq.s32.totalorder %s198_s13, 0  ;;  %p212_p2 = scmp.eq.s32.totalorder %s4319_s9, 1 }
   0x7   : > { %p217_p3 = scmp.ne.s32.totalorder %s4238_s28, %s4234_s27  ;;  %p218_p4 = scmp.eq.s32.totalorder %s3143_s10, 1 }
   0x8   : > { %s4334_s14 = scalar_select %p199_p1, %s4242_s29, %s201_s12  }
   0x9   : > { %p4336_p5 = por %p212_p2, %p211_p0  ;;  %p4340_p6 = por %p218_p4, %p217_p3 }
   0xa   : > { %p3146_p7 = scmp.ge.s32.totalorder %s4246_s30, 1  ;;  %p265_p8 = scmp.lt.s32.totalorder %s4246_s30, 3 }
   0xc   : > { %p266_p9 = pnand %p3146_p7, %p265_p8 }
   0xd   : > { %p298_p10 = scmp.lt.s32.totalorder (!%p266_p9), %s4319_s9, 1  ;;  %v396_v0 = vld [vmem:[%s4983_s1] sm:$0xff] (!%p266_p9)  ;;  %v397_v1 = vld [vmem:[%s4983_s1 + $0x8] sm:$0xff] (!%p266_p9)  ;;  %v398_v2 = vld [vmem:[%s4983_s1 + $0x10] sm:$0xff] (!%p266_p9)  ;;  %v4248_v3 = vmov (!%p266_p9), 0   ;;  %v4249_v6 = vmov (!%p266_p9), 0.0|0.0   ;;  %v316_v26 = vlaneseq (!%p266_p9) }
   0xe   : > { %269 = sbr.rel (%p266_p9) target bundleno = 975 (0x3cf), region = 52  ;;  %4183 = vset.pattern.permute.xlu1 (!%p266_p9), %v4248_v3  ;;  %4182 = vset.pattern.permute.xlu0 (!%p266_p9), %v4248_v3  ;;  %v3914_v4 = vpack.c.bf16 (!%p266_p9), %v397_v1, %v396_v0  ;;  %v399_v5 = vld [vmem:[%s4983_s1 + $0x18] sm:$0xff] (!%p266_p9)  ;;  %v400_v8 = vld [vmem:[%s4983_s1 + $0x20] sm:$0xff] (!%p266_p9)  ;;  %v401_v9 = vld [vmem:[%s4983_s1 + $0x28] sm:$0xff] (!%p266_p9)  ;;  %vm4250_vm0 = vmmov (!%p266_p9), 0   ;;  %v4251_v15 = vmov (!%p266_p9), 0.0  }
   0xf   : > { %3913 = vmatprep.subr.bf16.mxu1 (!%p266_p9), %v4249_v6  ;;  %v3917_v7 = vpack.c.bf16 (!%p266_p9), %v399_v5, %v398_v2  ;;  %v3920_v12 = vpack.c.bf16 (!%p266_p9), %v401_v9, %v400_v8  ;;  %3562 = vmatprep.mubr.msk.f32.mxu1 (!%p266_p9), %vm4250_vm0, %v4251_v15  ;;  %v402_v16 = vld [vmem:[%s4983_s1 + $0x30] sm:$0x3] (!%p266_p9)  ;;  %vm443_vm1 = vcmask (!%p266_p9), 1041408   ;;  %v4390_v27 = vand.u32 (!%p266_p9), 127, %v316_v26  ;;  %v596_v54 = vld [vmem:[%s4984_s2 + $0x20] sm:$0xff] (!%p266_p9)  ;;  %v597_v55 = vld [vmem:[%s4984_s2 + $0x28] sm:$0xff] (!%p266_p9) }
  0x10   : > { %3915 = vmatpush3.bf16.msra.mxu1 (!%p266_p9), %v3914_v4  ;;  %vm403_vm2 = vcmask (!%p266_p9), 408576   ;;  %v1584_v56 = vld [vmem:[%s4986_s4 + $0x20] sm:$0xff] (!%p266_p9)  ;;  %v3922_v57 = vpack.c.bf16 (!%p266_p9), %v597_v55, %v596_v54  ;;  %v1585_v58 = vld [vmem:[%s4986_s4 + $0x28] sm:$0xff] (!%p266_p9)  ;;  %v598_v60 = vld [vmem:[%s4984_s2 + $0x30] sm:$0xff] (!%p266_p9)  ;;  %s296_s12 = sand.u32 (!%p266_p9), 1, %s4238_s28  }
  0x11   : > { %3916 = vmatprep.subr.bf16.mxu1 (!%p266_p9), %v4249_v6  ;;  %v3962_v59 = vpack.c.bf16 (!%p266_p9), %v1585_v58, %v1584_v56  ;;  %v599_v61 = vld [vmem:[%s4984_s2 + $0x38] sm:$0xff] (!%p266_p9)  ;;  %v1586_v62 = vld [vmem:[%s4986_s4 + $0x30] sm:$0xff] (!%p266_p9)  ;;  %v1580_v2 = vld [vmem:[%s4986_s4] sm:$0xff] (!%p266_p9)  ;;  %s297_s21 = scalar_lea.vmem (!%p266_p9), [#allocation4], %s296_s12 }
  0x12   : > { %v3926_v63 = vpack.c.bf16 (!%p266_p9), %v599_v61, %v598_v60  ;;  %v1587_v0 = vld [vmem:[%s4986_s4 + $0x38] sm:$0xff] (!%p266_p9)  ;;  %v1581_v3 = vld [vmem:[%s4986_s4 + $0x8] sm:$0xff] (!%p266_p9)  ;;  %v592_v5 = vld [vmem:[%s4984_s2] sm:$0xff] (!%p266_p9)  ;;  %s3088_s22 = sshll.u32 (!%p266_p9), %s297_s21, 4  ;;  %s4942_s22 = int_to_ptr.vmem [resolvable:$true] %s3088_s22 }
  0x13   : > { %3963 = vmatprep.subr.bf16.mxu0 (!%p266_p9), %v3962_v59  ;;  %v3966_v1 = vpack.c.bf16 (!%p266_p9), %v1587_v0, %v1586_v62  ;;  %v3970_v4 = vpack.c.bf16 (!%p266_p9), %v1581_v3, %v1580_v2  ;;  %v1590_v58 = vld [vmem:[%s4986_s4 + $0x50] sm:$0xff] (!%p266_p9)  ;;  %v1592_v0 = vld [vmem:[%s4986_s4 + $0x60] sm:$0xff] (!%p266_p9)  ;;  %s4184_s10 = scalar_lea.vmem (!%p266_p9), %s4942_s22, 16 }
  0x14   : > { %3918 = vmatpush3.bf16.msra.mxu1 (!%p266_p9), %v3917_v7  ;;  %3965 = vmatpush3.bf16.msra.mxu0 (!%p266_p9), %v3962_v59  ;;  %v1591_v59 = vld [vmem:[%s4986_s4 + $0x58] sm:$0xff] (!%p266_p9)  ;;  %v602_v3 = vld [vmem:[%s4984_s2 + $0x50] sm:$0xff] (!%p266_p9)  ;;  %p4185_p11 = scmp.ne.s32.totalorder (!%p266_p9), %s4942_s22, %s4184_s10 }
  0x15   : > { %s299_s25 = scalar_select %p298_p10, %s4319_s9, 1  ;;  %3919 = vmatprep.subr.bf16.mxu1 %v4249_v6  ;;  %3967 = vmatprep.subr.bf16.mxu0 %v3966_v1  ;;  %v593_v6 = vld [vmem:[%s4984_s2 + $0x8] sm:$0xff]  ;;  %v3982_v62 = vpack.c.bf16 %v1591_v59, %v1590_v58 }
  0x16   : > { %v3930_v7 = vpack.c.bf16 %v593_v6, %v592_v5  ;;  %p4186_p12 = pnand %p4185_p11, %p4336_p5 }
  0x17   : > { %s4138_s26 = smul.u32 104, %s299_s25 }
  0x18   : > { %3921 = vmatpush3.bf16.msra.mxu1 %v3920_v12  ;;  %3969 = vmatpush3.bf16.msra.mxu0 %v3966_v1  ;;  %v1593_v1 = vld [vmem:[%s4986_s4 + $0x68] sm:$0xff]  ;;  %p4187_p13 = pneg %p4186_p12 }
  0x19   : > { %s4369_s20 = scalar_lea.vmem %s4982_s0, %s4138_s26  ;;  %3560 = vmatprep.subr.mxu1 %v4251_v15  ;;  %3971 = vmatprep.subr.bf16.mxu0 %v3970_v4  ;;  %v3986_v5 = vpack.c.bf16 %v1593_v1, %v1592_v0  ;;  %s3076_s26 = scalar_lea.sflag [#allocation5], %s296_s12 }
  0x1a   : > { %v305_v10 = vld [vmem:[%s4369_s20 + $0x10] sm:$0xff]  ;;  %v303_v11 = vld [vmem:[%s4369_s20] sm:$0xff]  ;;  %v306_v13 = vld [vmem:[%s4369_s20 + $0x18] sm:$0xff] }
  0x1b   : > { %325 = vperm.xlu1 %4183, %v305_v10   ;;  %319 = vperm.xlu0 %4182, %v303_v11   ;;  %v304_v14 = vld [vmem:[%s4369_s20 + $0x8] sm:$0xff]  ;;  %v307_v18 = vld [vmem:[%s4369_s20 + $0x20] sm:$0xff]  ;;  %v310_v19 = vld [vmem:[%s4369_s20 + $0x38] sm:$0xff] }
  0x1c   : > { %v308_v17 = vld [vmem:[%s4369_s20 + $0x28] sm:$0xff]  ;;  %3561 = vmatpush3.msk.msra.mxu1 %vm443_vm1, %v402_v16  ;;  %v309_v20 = vld [vmem:[%s4369_s20 + $0x30] sm:$0xff]  ;;  %v311_v22 = vld [vmem:[%s4369_s20 + $0x40] sm:$0xff]  ;;  %vm590_vm1 = vcmask 257024  }
  0x1d   : > { %v312_v21 = vld [vmem:[%s4369_s20 + $0x48] sm:$0xff]  ;;  %v314_v23 = vld [vmem:[%s4369_s20 + $0x58] sm:$0xff]  ;;  %v313_v24 = vld [vmem:[%s4369_s20 + $0x50] sm:$0xff]  ;;  %3923 = vmatprep.subr.bf16.mxu1 %v3922_v57 }
  0x1e   : > { %v315_v25 = vld [vmem:[%s4369_s20 + $0x60] sm:$0xf]  ;;  %s3333_s20 = sshll.u32 %s4319_s9, 4  ;;  %s4252_s9 = smov [#allocation4]  }
  0x1f   : > { %328 = vperm.xlu1 %4183, %v306_v13   ;;  %322 = vperm.xlu0 %4182, %v304_v14   ;;  %v1582_v14 = vld [vmem:[%s4986_s4 + $0x10] sm:$0xff]  ;;  %s4940_s25 = scalar_lea.hbm %s4990_s8, %s3333_s20  ;;  %s4188_s13 = sshll.u32 %s4252_s9, 4  ;;  %s4189_s13 = int_to_ptr.vmem [resolvable:$false] %s4188_s13 }
  0x20   : > { %s4190_s17 = scalar_lea.vmem %s4189_s13, 32  ;;  %p4191_p0 = scmp.lt.s32.totalorder %s4942_s22, %s4189_s13 }
  0x21   : > { %p4192_p1 = scmp.lt.s32.totalorder %s4190_s17, %s4184_s10 }
  0x23   : > { %334 = vperm.xlu1 %4183, %v308_v17   ;;  %331 = vperm.xlu0 %4182, %v307_v18   ;;  %v594_v18 = vld [vmem:[%s4984_s2 + $0x10] sm:$0xff]  ;;  %p4193_p2 = por %p4192_p1, %p4191_p0 }
  0x25   : > { %p4194_p3 = pnand %p4193_p2, %p4187_p13 }
  0x27   : > { %340 = vperm.xlu1 %4183, %v310_v19   ;;  %337 = vperm.xlu0 %4182, %v309_v20   ;;  %v595_v19 = vld [vmem:[%s4984_s2 + $0x18] sm:$0xff] }
  0x2b   : > { %346 = vperm.xlu1 %4183, %v312_v21   ;;  %343 = vperm.xlu0 %4182, %v311_v22   ;;  %v3934_v22 = vpack.c.bf16 %v595_v19, %v594_v18  ;;  %v1594_v19 = vld [vmem:[%s4986_s4 + $0x70] sm:$0xff] }
  0x2f   : > { %352 = vperm.xlu1 %4183, %v314_v23   ;;  %349 = vperm.xlu0 %4182, %v313_v24   ;;  %v1588_v23 = vld [vmem:[%s4986_s4 + $0x40] sm:$0xff]  ;;  %v1589_v24 = vld [vmem:[%s4986_s4 + $0x48] sm:$0xff] }
  0x33   : > { %355 = vperm.xlu0 %4182, %v315_v25  }
  0x9a   : > { %v320_v28 = vpop.permute.xlu0 %319  ;;  %v326_v30 = vpop.permute.xlu1 %325 }
  0x9b   : > { %vm357_vm3 = vcmp.eq.s32.totalorder %v320_v28, %v4390_v27  ;;  %vm359_vm4 = vcmp.eq.s32.totalorder %v326_v30, %v4390_v27  ;;  %v601_v28 = vld [vmem:[%s4984_s2 + $0x48] sm:$0xff]  ;;  %v4524_v30 = vpack.c.bf16 %v1589_v24, %v1588_v23 }
  0x9c   : > { %v3148_v29 = vsel %vm357_vm3, 1.0, %v4251_v15  ;;  %v3150_v33 = vsel %vm359_vm4, 1.0, %v4251_v15  ;;  %vm2909_vm3 = vcmask 62464   ;;  %vm2988_vm4 = vcmask 63488  }
  0x9d   : > { %3563 = vmatmul.mubr.msk.f32.vlgmr.msra.gmra.mrb[0].mxu1 %vm403_vm2, %v3148_v29 }
  0x9e   : > { %v323_v31 = vpop.permute.xlu0 %322  ;;  %3565 = vmatprep.mubr.msk.f32.mxu1 %vm4250_vm0, %v4251_v15  ;;  %v329_v34 = vpop.permute.xlu1 %328  ;;  %3925 = vmatpush3.bf16.msra.mxu1 %v3922_v57 }
  0x9f   : > { %vm358_vm5 = vcmp.eq.s32.totalorder %v323_v31, %v4390_v27  ;;  %vm360_vm6 = vcmp.eq.s32.totalorder %v329_v34, %v4390_v27  ;;  %3927 = vmatprep.subr.bf16.mxu1 %v3926_v63 }
  0xa0   : > { %v3149_v32 = vsel %vm358_vm5, 1.0, %v4251_v15  ;;  %v3151_v36 = vsel %vm360_vm6, 1.0, %v4251_v15  ;;  %vm3003_vm5 = vcmask 0   ;;  %vm3073_vm6 = vcmask 8200  }
  0xa1   : > { %3566 = vmatmul.mubr.msk.f32.gmra.mrb[2].mxu1 %vm403_vm2, %v3149_v32 }
  0xa2   : > { %3568 = vmatprep.mubr.msk.f32.mxu1 %vm4250_vm0, %v4251_v15  ;;  %v332_v35 = vpop.permute.xlu0 %331  ;;  %v335_v37 = vpop.permute.xlu1 %334  ;;  %3929 = vmatpush3.bf16.msra.mxu1 %v3926_v63 }
  0xa3   : > { %vm361_vm7 = vcmp.eq.s32.totalorder %v332_v35, %v4390_v27  ;;  %vm362_vm8 = vcmp.eq.s32.totalorder %v335_v37, %v4390_v27  ;;  %3931 = vmatprep.subr.bf16.mxu1 %v3930_v7 }
  0xa4   : > { %v3152_v38 = vsel %vm361_vm7, 1.0, %v4251_v15  ;;  %v3153_v40 = vsel %vm362_vm8, 1.0, %v4251_v15 }
  0xa5   : > { %3569 = vmatmul.mubr.msk.f32.gmra.mrb[4].mxu1 %vm403_vm2, %v3150_v33 }
  0xa6   : > { %3571 = vmatprep.mubr.msk.f32.mxu1 %vm4250_vm0, %v4251_v15  ;;  %v338_v39 = vpop.permute.xlu0 %337  ;;  %v341_v41 = vpop.permute.xlu1 %340 }
  0xa7   : > { %vm363_vm9 = vcmp.eq.s32.totalorder %v338_v39, %v4390_v27  ;;  %vm364_vm10 = vcmp.eq.s32.totalorder %v341_v41, %v4390_v27 }
  0xa8   : > { %v3154_v42 = vsel %vm363_vm9, 1.0, %v4251_v15  ;;  %v3155_v44 = vsel %vm364_vm10, 1.0, %v4251_v15 }
  0xa9   : > { %3572 = vmatmul.mubr.msk.f32.gmra.mrb[6].mxu1 %vm403_vm2, %v3151_v36 }
  0xaa   : > { %3574 = vmatprep.mubr.msk.f32.mxu1 %vm4250_vm0, %v4251_v15  ;;  %v344_v43 = vpop.permute.xlu0 %343  ;;  %v347_v45 = vpop.permute.xlu1 %346 }
  0xab   : > { %vm365_vm11 = vcmp.eq.s32.totalorder %v344_v43, %v4390_v27  ;;  %vm366_vm12 = vcmp.eq.s32.totalorder %v347_v45, %v4390_v27 }
  0xac   : > { %v3156_v46 = vsel %vm365_vm11, 1.0, %v4251_v15  ;;  %v3157_v48 = vsel %vm366_vm12, 1.0, %v4251_v15 }
  0xad   : > { %3575 = vmatmul.mubr.msk.f32.gmra.mrb[8].mxu1 %vm403_vm2, %v3152_v38 }
  0xae   : > { %3577 = vmatprep.mubr.msk.f32.mxu1 %vm4250_vm0, %v4251_v15  ;;  %v350_v47 = vpop.permute.xlu0 %349  ;;  %v353_v49 = vpop.permute.xlu1 %352 }
  0xaf   : > { %vm367_vm13 = vcmp.eq.s32.totalorder %v350_v47, %v4390_v27  ;;  %vm368_vm14 = vcmp.eq.s32.totalorder %v353_v49, %v4390_v27 }
  0xb0   : > { %v3158_v50 = vsel %vm367_vm13, 1.0, %v4251_v15  ;;  %v3159_v52 = vsel %vm368_vm14, 1.0, %v4251_v15 }
  0xb1   : > { %3578 = vmatmul.mubr.msk.f32.gmra.mrb[10].mxu1 %vm403_vm2, %v3153_v40 }
  0xb2   : > { %3580 = vmatprep.mubr.msk.f32.mxu1 %vm4250_vm0, %v4251_v15  ;;  %v356_v51 = vpop.permute.xlu0 %355 }
  0xb3   : > { %vm369_vm15 = vcmp.eq.s32.totalorder %v356_v51, %v4390_v27  ;;  %v600_v27 = vld [vmem:[%s4984_s2 + $0x40] sm:$0xff] }
  0xb4   : > { %v3160_v53 = vsel %vm369_vm15, 1.0, %v4251_v15  ;;  %v4526_v31 = vpack.c.bf16 %v601_v28, %v600_v27  ;;  %v606_v28 = vld [vmem:[%s4984_s2 + $0x70] sm:$0xff] }
  0xb5   : > { %3581 = vmatmul.mubr.msk.f32.gmra.mrb[12].mxu1 %vm403_vm2, %v3154_v42 }
  0xb6   : > { %3583 = vmatprep.mubr.msk.f32.mxu1 %vm4250_vm0, %v4251_v15 }
  0xb9   : > { %3584 = vmatmul.mubr.msk.f32.gmra.mrb[14].mxu1 %vm403_vm2, %v3155_v44 }
  0xba   : > { %3586 = vmatprep.mubr.msk.f32.mxu1 %vm4250_vm0, %v4251_v15 }
  0xbd   : > { %3587 = vmatmul.mubr.msk.f32.gmra.mrb[16].mxu1 %vm403_vm2, %v3156_v46 }
  0xbe   : > { %3589 = vmatprep.mubr.msk.f32.mxu1 %vm4250_vm0, %v4251_v15 }
  0xc1   : > { %3590 = vmatmul.mubr.msk.f32.gmra.mrb[18].mxu1 %vm403_vm2, %v3157_v48 }
  0xc2   : > { %3592 = vmatprep.mubr.msk.f32.mxu1 %vm4250_vm0, %v4251_v15 }
  0xc5   : > { %3593 = vmatmul.mubr.msk.f32.gmra.mrb[20].mxu1 %vm403_vm2, %v3158_v50 }
  0xc6   : > { %3595 = vmatprep.mubr.msk.f32.mxu1 %vm4250_vm0, %v4251_v15 }
  0xc9   : > { %3596 = vmatmul.mubr.msk.f32.gmra.mrb[22].mxu1 %vm403_vm2, %v3159_v52 }
  0xca   : > { %3598 = vmatprep.mubr.msk.f32.mxu1 %vm4250_vm0, %v4251_v15  ;;  %vm577_vm0 = vcmask 261120   ;;  %v1583_v15 = vld [vmem:[%s4986_s4 + $0x18] sm:$0xff] }
  0xcb   : > { %v3974_v21 = vpack.c.bf16 %v1583_v15, %v1582_v14 }
  0xcd   : > { %3599 = vmatmul.mubr.msk.f32.gmra.mrb[24].mxu1 %vm403_vm2, %v3160_v53  ;;  %vm1532_vm2 = vcmask 64512  }
 0x170   : > { %v513_v8 = vpop.f32.mrb[0].mxu1 }
 0x171   : > { %578 = vst.msk [vmem:[#allocation2] sm:$0xff] %vm577_vm0, %v513_v8  ;;  %v3564_v9 = vpop.f32.mrb[1].mxu1 }
 0x172   : > { %v604_v9 = vld [vmem:[%s4984_s2 + $0x60] sm:$0xff] }
 0x174   : > { %v518_v10 = vpop.f32.mrb[2].mxu1 }
 0x175   : > { %579 = vst.msk [vmem:[#allocation2 + $0x8] sm:$0xff] %vm577_vm0, %v518_v10  ;;  %v3567_v11 = vpop.f32.mrb[3].mxu1  ;;  %v605_v10 = vld [vmem:[%s4984_s2 + $0x68] sm:$0xff] }
 0x178   : > { %v523_v12 = vpop.f32.mrb[4].mxu1  ;;  %v1608_v60 = vld [vmem:[#allocation2] sm:$0xff] }
 0x179   : > { %580 = vst.msk [vmem:[#allocation2 + $0x10] sm:$0xff] %vm577_vm0, %v523_v12  ;;  %v3570_v13 = vpop.f32.mrb[5].mxu1  ;;  %v3946_v12 = vpack.c.bf16 %v605_v10, %v604_v9  ;;  %v1605_v9 = vld [vmem:[%s4986_s4 + $0xc8] sm:$0xff] }
 0x17c   : > { %v528_v16 = vpop.f32.mrb[6].mxu1  ;;  %v624_v17 = vld [vmem:[#allocation2 + $0x1] sm:$0xff] }
 0x17d   : > { %581 = vst.msk [vmem:[#allocation2 + $0x18] sm:$0xff] %vm577_vm0, %v528_v16  ;;  %v3573_v20 = vpop.f32.mrb[7].mxu1  ;;  %3609 = vmatprep.mubr.msk.f32.mxu1 %vm577_vm0, %v624_v17  ;;  %3739 = vmatprep.mubr.msk.f32.mxu0 %vm577_vm0, %v624_v17  ;;  %v1609_v63 = vld [vmem:[#allocation2 + $0x8] sm:$0xff] }
 0x17e   : > { %v1595_v20 = vld [vmem:[%s4986_s4 + $0x78] sm:$0xff] }
 0x17f   : > { %v3990_v23 = vpack.c.bf16 %v1595_v20, %v1594_v19 }
 0x180   : > { %v533_v25 = vpop.f32.mrb[8].mxu1  ;;  %v625_v26 = vld [vmem:[#allocation2 + $0x9] sm:$0xff] }
 0x181   : > { %582 = vst.msk [vmem:[#allocation2 + $0x20] sm:$0xff] %vm577_vm0, %v533_v25  ;;  %v3576_v29 = vpop.f32.mrb[9].mxu1  ;;  %3610 = vmatmul.mubr.msk.f32.vlgmr.msra.gmra.mrb[26].mxu1 %vm577_vm0, %v625_v26  ;;  %3740 = vmatmul.mubr.msk.f32.vlgmr.msra.gmra.mrb[0].mxu0 %vm577_vm0, %v625_v26  ;;  %v1610_v2 = vld [vmem:[#allocation2 + $0x10] sm:$0xff]  ;;  %v1596_v25 = vld [vmem:[%s4986_s4 + $0x80] sm:$0xff]  ;;  %v1597_v26 = vld [vmem:[%s4986_s4 + $0x88] sm:$0xff] }
 0x182   : > { %3973 = vmatpush3.bf16.msra.mxu0 %v3970_v4  ;;  %3933 = vmatpush3.bf16.msra.mxu1 %v3930_v7  ;;  %v603_v4 = vld [vmem:[%s4984_s2 + $0x58] sm:$0xff]  ;;  %v1955_v24 = vld [vmem:[#allocation2 + $0xa] sm:$0xff] }
 0x183   : > { %3975 = vmatprep.subr.bf16.mxu0 %v3974_v21  ;;  %3935 = vmatprep.subr.bf16.mxu1 %v3934_v22  ;;  %v3942_v7 = vpack.c.bf16 %v603_v4, %v602_v3  ;;  %v607_v29 = vld [vmem:[%s4984_s2 + $0x78] sm:$0xff]  ;;  %v2324_v4 = vld [vmem:[#allocation2 + $0x4] sm:$0xff] }
 0x184   : > { %v538_v32 = vpop.f32.mrb[10].mxu1  ;;  %v626_v33 = vld [vmem:[#allocation2 + $0x11] sm:$0xff] }
 0x185   : > { %583 = vst.msk [vmem:[#allocation2 + $0x28] sm:$0xff] %vm577_vm0, %v538_v32  ;;  %v3579_v34 = vpop.f32.mrb[11].mxu1  ;;  %3612 = vmatprep.mubr.msk.f32.mxu1 %vm577_vm0, %v626_v33  ;;  %3742 = vmatprep.mubr.msk.f32.mxu0 %vm577_vm0, %v626_v33  ;;  %v1611_v6 = vld [vmem:[#allocation2 + $0x18] sm:$0xff]  ;;  %v3950_v32 = vpack.c.bf16 %v607_v29, %v606_v28 }
 0x186   : > { %3977 = vmatpush3.bf16.msra.mxu0 %v3974_v21  ;;  %3937 = vmatpush3.bf16.msra.mxu1 %v3934_v22  ;;  %v1954_v21 = vld [vmem:[#allocation2 + $0x2] sm:$0xff]  ;;  %v1956_v27 = vld [vmem:[#allocation2 + $0x12] sm:$0xff] }
 0x187   : > { %3979 = vmatprep.subr.bf16.mxu0 %v4524_v30  ;;  %3939 = vmatprep.subr.bf16.mxu1 %v4526_v31  ;;  %v608_v34 = vld [vmem:[%s4984_s2 + $0x80] sm:$0xff]  ;;  %v1603_v3 = vld [vmem:[%s4986_s4 + $0xb8] sm:$0xff] }
 0x188   : > { %v543_v35 = vpop.f32.mrb[12].mxu1  ;;  %v627_v36 = vld [vmem:[#allocation2 + $0x19] sm:$0xff] }
 0x189   : > { %584 = vst.msk [vmem:[#allocation2 + $0x30] sm:$0xff] %vm577_vm0, %v543_v35  ;;  %v3582_v37 = vpop.f32.mrb[13].mxu1  ;;  %3613 = vmatmul.mubr.msk.f32.gmra.mrb[28].mxu1 %vm577_vm0, %v627_v36  ;;  %3743 = vmatmul.mubr.msk.f32.gmra.mrb[2].mxu0 %vm577_vm0, %v627_v36  ;;  %v1612_v8 = vld [vmem:[#allocation2 + $0x20] sm:$0xff]  ;;  %v609_v35 = vld [vmem:[%s4984_s2 + $0x88] sm:$0xff]  ;;  %v2326_v10 = vld [vmem:[#allocation2 + $0x14] sm:$0xff] }
 0x18a   : > { %v3954_v37 = vpack.c.bf16 %v609_v35, %v608_v34  ;;  %v2512_v28 = vld [vmem:[#allocation2 + $0x1d] sm:$0xff] }
 0x18c   : > { %v548_v38 = vpop.f32.mrb[14].mxu1  ;;  %v628_v39 = vld [vmem:[#allocation2 + $0x21] sm:$0xff] }
 0x18d   : > { %585 = vst.msk [vmem:[#allocation2 + $0x38] sm:$0xff] %vm577_vm0, %v548_v38  ;;  %v3585_v40 = vpop.f32.mrb[15].mxu1  ;;  %3615 = vmatprep.mubr.msk.f32.mxu1 %vm577_vm0, %v628_v39  ;;  %3745 = vmatprep.mubr.msk.f32.mxu0 %vm577_vm0, %v628_v39  ;;  %v1613_v11 = vld [vmem:[#allocation2 + $0x28] sm:$0xff] }
 0x18e   : > { %v1958_v33 = vld [vmem:[#allocation2 + $0x22] sm:$0xff] }
 0x18f   : > { %v2143_v58 = vld [vmem:[#allocation2 + $0x23] sm:$0xff] }
 0x190   : > { %v553_v41 = vpop.f32.mrb[16].mxu1  ;;  %v629_v42 = vld [vmem:[#allocation2 + $0x29] sm:$0xff] }
 0x191   : > { %586 = vst.msk [vmem:[#allocation2 + $0x40] sm:$0xff] %vm577_vm0, %v553_v41  ;;  %v3588_v43 = vpop.f32.mrb[17].mxu1  ;;  %3616 = vmatmul.mubr.msk.f32.gmra.mrb[30].mxu1 %vm577_vm0, %v629_v42  ;;  %3746 = vmatmul.mubr.msk.f32.gmra.mrb[4].mxu0 %vm577_vm0, %v629_v42  ;;  %v1614_v13 = vld [vmem:[#allocation2 + $0x30] sm:$0xff]  ;;  %v2513_v29 = vld [vmem:[#allocation2 + $0x25] sm:$0xff] }
 0x192   : > { %v1959_v36 = vld [vmem:[#allocation2 + $0x2a] sm:$0xff] }
 0x193   : > { %v2144_v59 = vld [vmem:[#allocation2 + $0x2b] sm:$0xff] }
 0x194   : > { %v558_v44 = vpop.f32.mrb[18].mxu1  ;;  %v630_v45 = vld [vmem:[#allocation2 + $0x31] sm:$0xff] }
 0x195   : > { %587 = vst.msk [vmem:[#allocation2 + $0x48] sm:$0xff] %vm577_vm0, %v558_v44  ;;  %v3591_v46 = vpop.f32.mrb[19].mxu1  ;;  %3618 = vmatprep.mubr.msk.f32.mxu1 %vm577_vm0, %v630_v45  ;;  %3748 = vmatprep.mubr.msk.f32.mxu0 %vm577_vm0, %v630_v45  ;;  %v1615_v14 = vld [vmem:[#allocation2 + $0x38] sm:$0xff]  ;;  %v1598_v44 = vld [vmem:[%s4986_s4 + $0x90] sm:$0xff] }
 0x196   : > { %v1960_v38 = vld [vmem:[#allocation2 + $0x32] sm:$0xff]  ;;  %v2139_v46 = vld [vmem:[#allocation2 + $0x3] sm:$0xff] }
 0x197   : > { %v1599_v45 = vld [vmem:[%s4986_s4 + $0x98] sm:$0xff] }
 0x198   : > { %v563_v47 = vpop.f32.mrb[20].mxu1  ;;  %v631_v48 = vld [vmem:[#allocation2 + $0x39] sm:$0xff] }
 0x199   : > { %588 = vst.msk [vmem:[#allocation2 + $0x50] sm:$0xff] %vm577_vm0, %v563_v47  ;;  %v3594_v49 = vpop.f32.mrb[21].mxu1  ;;  %3619 = vmatmul.mubr.msk.f32.gmra.mrb[32].mxu1 %vm577_vm0, %v631_v48  ;;  %3749 = vmatmul.mubr.msk.f32.gmra.mrb[6].mxu0 %vm577_vm0, %v631_v48  ;;  %v1616_v15 = vld [vmem:[#allocation2 + $0x40] sm:$0xff]  ;;  %v3998_v48 = vpack.c.bf16 %v1599_v45, %v1598_v44 }
 0x19a   : > { %v1961_v39 = vld [vmem:[#allocation2 + $0x3a] sm:$0xff]  ;;  %v2140_v49 = vld [vmem:[#allocation2 + $0xb] sm:$0xff] }
 0x19b   : > { %v2701_v44 = vld [vmem:[#allocation2 + $0x3e] sm:$0xff] }
 0x19c   : > { %v568_v50 = vpop.f32.mrb[22].mxu1  ;;  %v632_v51 = vld [vmem:[#allocation2 + $0x41] sm:$0xff] }
 0x19d   : > { %589 = vst.msk [vmem:[#allocation2 + $0x58] sm:$0xff] %vm577_vm0, %v568_v50  ;;  %v3597_v52 = vpop.f32.mrb[23].mxu1  ;;  %3621 = vmatprep.mubr.msk.f32.mxu1 %vm577_vm0, %v632_v51  ;;  %3751 = vmatprep.mubr.msk.f32.mxu0 %vm577_vm0, %v632_v51  ;;  %v1617_v16 = vld [vmem:[#allocation2 + $0x48] sm:$0xff]  ;;  %v1600_v50 = vld [vmem:[%s4986_s4 + $0xa0] sm:$0xff] }
 0x19e   : > { %v1962_v40 = vld [vmem:[#allocation2 + $0x42] sm:$0xff]  ;;  %v2141_v52 = vld [vmem:[#allocation2 + $0x13] sm:$0xff] }
 0x19f   : > { %v1601_v51 = vld [vmem:[%s4986_s4 + $0xa8] sm:$0xff] }
 0x1a0   : > { %v573_v53 = vpop.f32.mrb[24].mxu1  ;;  %v633_v54 = vld [vmem:[#allocation2 + $0x49] sm:$0xff] }
 0x1a1   : > { %591 = vst.msk [vmem:[#allocation2 + $0x60] sm:$0xf] %vm590_vm1, %v573_v53  ;;  %v3600_v55 = vpop.f32.mrb[25].mxu1  ;;  %3622 = vmatmul.mubr.msk.f32.gmra.mrb[34].mxu1 %vm577_vm0, %v633_v54  ;;  %3752 = vmatmul.mubr.msk.f32.gmra.mrb[8].mxu0 %vm577_vm0, %v633_v54  ;;  %v1618_v17 = vld [vmem:[#allocation2 + $0x50] sm:$0xff]  ;;  %v611_v54 = vld [vmem:[%s4984_s2 + $0x98] sm:$0xff]  ;;  %v2702_v45 = vld [vmem:[#allocation2 + $0x46] sm:$0xff] }
 0x1a2   : > { %v1963_v41 = vld [vmem:[#allocation2 + $0x4a] sm:$0xff]  ;;  %v4002_v55 = vpack.c.bf16 %v1601_v51, %v1600_v50 }
 0x1a3   : > { %v610_v53 = vld [vmem:[%s4984_s2 + $0x90] sm:$0xff] }
 0x1a4   : > { %v634_v56 = vld [vmem:[#allocation2 + $0x51] sm:$0xff]  ;;  %v1631_v57 = vld [vmem:[#allocation2 + $0x59] sm:$0x3f] }
 0x1a5   : > { %3624 = vmatprep.mubr.msk.f32.mxu1 %vm577_vm0, %v634_v56  ;;  %3754 = vmatprep.mubr.msk.f32.mxu0 %vm577_vm0, %v634_v56  ;;  %v1619_v18 = vld [vmem:[#allocation2 + $0x58] sm:$0x3f]  ;;  %v2518_v34 = vld [vmem:[#allocation2 + $0x4d] sm:$0xff] }
 0x1a6   : > { %3755 = vmatmul.mubr.msk.f32.gmra.mrb[10].mxu0 %vm577_vm0, %v1631_v57  ;;  %v623_v22 = vld [vmem:[#allocation2 + $0x58] sm:$0xff]  ;;  %v3958_v57 = vpack.c.bf16 %v611_v54, %v610_v53 }
 0x1a7   : > { %3765 = vmatprep.mubr.msk.f32.mxu0 %vm577_vm0, %v1608_v60  ;;  %v1964_v42 = vld [vmem:[#allocation2 + $0x52] sm:$0xff]  ;;  %v1965_v43 = vld [vmem:[#allocation2 + $0x5a] sm:$0x3f] }
 0x1a8   : > { %v635_v61 = vld [vmem:[#allocation2 + $0x59] sm:$0xff] }
 0x1a9   : > { %3625 = vmatmul.mubr.msk.f32.gmra.mrb[36].mxu1 %vm577_vm0, %v635_v61  ;;  %v969_v47 = vld [vmem:[#allocation2 + $0x5a] sm:$0xff] }
 0x1aa   : > { %3635 = vmatprep.mubr.msk.f32.mxu1 %vm577_vm0, %v1608_v60  ;;  %3766 = vmatmul.mubr.msk.f32.vlgmr.msra.gmra.mrb[0].mxu0 %vm577_vm0, %v1609_v63  ;;  %v2142_v56 = vld [vmem:[#allocation2 + $0x1b] sm:$0xff]  ;;  %v2145_v60 = vld [vmem:[#allocation2 + $0x33] sm:$0xff] }
 0x1ab   : > { %3981 = vmatpush3.bf16.msra.mxu0 %v4524_v30  ;;  %3768 = vmatprep.mubr.msk.f32.mxu0 %vm577_vm0, %v1610_v2  ;;  %v3994_v30 = vpack.c.bf16 %v1597_v26, %v1596_v25  ;;  %v2146_v61 = vld [vmem:[#allocation2 + $0x3b] sm:$0xff]  ;;  %v2149_v0 = vld [vmem:[#allocation2 + $0x53] sm:$0xff] }
 0x1ac   : > { %3983 = vmatprep.subr.bf16.mxu0 %v3982_v62  ;;  %v2150_v1 = vld [vmem:[#allocation2 + $0x5b] sm:$0x3f]  ;;  %v2510_v26 = vld [vmem:[#allocation2 + $0xd] sm:$0xff] }
 0x1ad   : > { %3636 = vmatmul.mubr.msk.f32.vlgmr.msra.gmra.mrb[26].mxu1 %vm577_vm0, %v1609_v63  ;;  %v2148_v63 = vld [vmem:[#allocation2 + $0x4b] sm:$0xff]  ;;  %v2334_v19 = vld [vmem:[#allocation2 + $0x54] sm:$0xff]  ;;  %v2335_v20 = vld [vmem:[#allocation2 + $0x5c] sm:$0x3f] }
 0x1ae   : > { %3638 = vmatprep.mubr.msk.f32.mxu1 %vm577_vm0, %v1610_v2  ;;  %3769 = vmatmul.mubr.msk.f32.gmra.mrb[2].mxu0 %vm577_vm0, %v1611_v6  ;;  %v1602_v2 = vld [vmem:[%s4986_s4 + $0xb0] sm:$0xff] }
 0x1af   : > { %3771 = vmatprep.mubr.msk.f32.mxu0 %vm577_vm0, %v1612_v8  ;;  %3985 = vmatpush3.bf16.msra.mxu0 %v3982_v62  ;;  %v2147_v62 = vld [vmem:[#allocation2 + $0x43] sm:$0xff]  ;;  %v2519_v35 = vld [vmem:[#allocation2 + $0x55] sm:$0xff] }
 0x1b0   : > { %3941 = vmatpush3.bf16.msra.mxu1 %v4526_v31  ;;  %3987 = vmatprep.subr.bf16.mxu0 %v3986_v5  ;;  %v1957_v31 = vld [vmem:[#allocation2 + $0x1a] sm:$0xff] }
 0x1b1   : > { %3639 = vmatmul.mubr.msk.f32.gmra.mrb[28].mxu1 %vm577_vm0, %v1611_v6  ;;  %3943 = vmatprep.subr.bf16.mxu1 %v3942_v7  ;;  %v4006_v6 = vpack.c.bf16 %v1603_v3, %v1602_v2 }
 0x1b2   : > { %3641 = vmatprep.mubr.msk.f32.mxu1 %vm577_vm0, %v1612_v8  ;;  %3772 = vmatmul.mubr.msk.f32.gmra.mrb[4].mxu0 %vm577_vm0, %v1613_v11  ;;  %v1604_v8 = vld [vmem:[%s4986_s4 + $0xc0] sm:$0xff] }
 0x1b3   : > { %3774 = vmatprep.mubr.msk.f32.mxu0 %vm577_vm0, %v1614_v13 }
 0x1b4   : > { %3945 = vmatpush3.bf16.msra.mxu1 %v3942_v7  ;;  %v2325_v7 = vld [vmem:[#allocation2 + $0xc] sm:$0xff] }
 0x1b5   : > { %3642 = vmatmul.mubr.msk.f32.gmra.mrb[30].mxu1 %vm577_vm0, %v1613_v11  ;;  %3947 = vmatprep.subr.bf16.mxu1 %v3946_v12  ;;  %v4010_v11 = vpack.c.bf16 %v1605_v9, %v1604_v8 }
 0x1b6   : > { %3644 = vmatprep.mubr.msk.f32.mxu1 %vm577_vm0, %v1614_v13  ;;  %3775 = vmatmul.mubr.msk.f32.gmra.mrb[6].mxu0 %vm577_vm0, %v1615_v14  ;;  %v2328_v13 = vld [vmem:[#allocation2 + $0x24] sm:$0xff] }
 0x1b7   : > { %3777 = vmatprep.mubr.msk.f32.mxu0 %vm577_vm0, %v1616_v15 }
 0x1b9   : > { %3645 = vmatmul.mubr.msk.f32.gmra.mrb[32].mxu1 %vm577_vm0, %v1615_v14  ;;  %v2329_v14 = vld [vmem:[#allocation2 + $0x2c] sm:$0xff] }
 0x1ba   : > { %3647 = vmatprep.mubr.msk.f32.mxu1 %vm577_vm0, %v1616_v15  ;;  %3778 = vmatmul.mubr.msk.f32.gmra.mrb[8].mxu0 %vm577_vm0, %v1617_v16  ;;  %v2330_v15 = vld [vmem:[#allocation2 + $0x34] sm:$0xff] }
 0x1bb   : > { %3780 = vmatprep.mubr.msk.f32.mxu0 %vm577_vm0, %v1618_v17 }
 0x1bd   : > { %3648 = vmatmul.mubr.msk.f32.gmra.mrb[34].mxu1 %vm577_vm0, %v1617_v16  ;;  %v2331_v16 = vld [vmem:[#allocation2 + $0x3c] sm:$0xff] }
 0x1be   : > { %3650 = vmatprep.mubr.msk.f32.mxu1 %vm577_vm0, %v1618_v17  ;;  %3781 = vmatmul.mubr.msk.f32.gmra.mrb[10].mxu0 %vm577_vm0, %v1619_v18  ;;  %v2332_v17 = vld [vmem:[#allocation2 + $0x44] sm:$0xff]  ;;  %v2333_v18 = vld [vmem:[#allocation2 + $0x4c] sm:$0xff] }
 0x1bf   : > { %3791 = vmatprep.mubr.msk.f32.mxu0 %vm577_vm0, %v1954_v21 }
 0x1c1   : > { %3651 = vmatmul.mubr.msk.f32.gmra.mrb[36].mxu1 %vm577_vm0, %v623_v22  ;;  %v1607_v22 = vld [vmem:[%s4986_s4 + $0xd8] sm:$0xff] }
 0x1c2   : > { %3661 = vmatprep.mubr.msk.f32.mxu1 %vm577_vm0, %v1954_v21  ;;  %3792 = vmatmul.mubr.msk.f32.vlgmr.msra.gmra.mrb[0].mxu0 %vm577_vm0, %v1955_v24  ;;  %v1606_v21 = vld [vmem:[%s4986_s4 + $0xd0] sm:$0xff] }
 0x1c3   : > { %3989 = vmatpush3.bf16.msra.mxu0 %v3986_v5  ;;  %3794 = vmatprep.mubr.msk.f32.mxu0 %vm577_vm0, %v1956_v27  ;;  %v1154_v5 = vld [vmem:[#allocation2 + $0x5b] sm:$0xff]  ;;  %v4014_v25 = vpack.c.bf16 %v1607_v22, %v1606_v21 }
 0x1c4   : > { %3991 = vmatprep.subr.bf16.mxu0 %v3990_v23 }
 0x1c5   : > { %3662 = vmatmul.mubr.msk.f32.vlgmr.msra.gmra.mrb[26].mxu1 %vm577_vm0, %v1955_v24  ;;  %v1339_v24 = vld [vmem:[#allocation2 + $0x5c] sm:$0xff] }
 0x1c6   : > { %3664 = vmatprep.mubr.msk.f32.mxu1 %vm577_vm0, %v1956_v27  ;;  %3795 = vmatmul.mubr.msk.f32.gmra.mrb[2].mxu0 %vm577_vm0, %v1957_v31  ;;  %v2511_v27 = vld [vmem:[#allocation2 + $0x15] sm:$0xff] }
 0x1c7   : > { %3797 = vmatprep.mubr.msk.f32.mxu0 %vm577_vm0, %v1958_v33  ;;  %3993 = vmatpush3.bf16.msra.mxu0 %v3990_v23  ;;  %v2509_v23 = vld [vmem:[#allocation2 + $0x5] sm:$0xff] }
 0x1c8   : > { %3949 = vmatpush3.bf16.msra.mxu1 %v3946_v12  ;;  %3995 = vmatprep.subr.bf16.mxu0 %v3994_v30  ;;  %v2327_v12 = vld [vmem:[#allocation2 + $0x1c] sm:$0xff] }
 0x1c9   : > { %3665 = vmatmul.mubr.msk.f32.gmra.mrb[28].mxu1 %vm577_vm0, %v1957_v31  ;;  %3951 = vmatprep.subr.bf16.mxu1 %v3950_v32  ;;  %v2515_v31 = vld [vmem:[#allocation2 + $0x35] sm:$0xff] }
 0x1ca   : > { %3667 = vmatprep.mubr.msk.f32.mxu1 %vm577_vm0, %v1958_v33  ;;  %3798 = vmatmul.mubr.msk.f32.gmra.mrb[4].mxu0 %vm577_vm0, %v1959_v36  ;;  %v2517_v33 = vld [vmem:[#allocation2 + $0x45] sm:$0xff] }
 0x1cb   : > { %3800 = vmatprep.mubr.msk.f32.mxu0 %vm577_vm0, %v1960_v38 }
 0x1cc   : > { %3953 = vmatpush3.bf16.msra.mxu1 %v3950_v32  ;;  %v2516_v32 = vld [vmem:[#allocation2 + $0x3d] sm:$0xff] }
 0x1cd   : > { %3668 = vmatmul.mubr.msk.f32.gmra.mrb[30].mxu1 %vm577_vm0, %v1959_v36  ;;  %3955 = vmatprep.subr.bf16.mxu1 %v3954_v37  ;;  %v2520_v36 = vld [vmem:[#allocation2 + $0x5d] sm:$0x3f] }
 0x1ce   : > { %3670 = vmatprep.mubr.msk.f32.mxu1 %vm577_vm0, %v1960_v38  ;;  %3801 = vmatmul.mubr.msk.f32.gmra.mrb[6].mxu0 %vm577_vm0, %v1961_v39  ;;  %v2695_v38 = vld [vmem:[#allocation2 + $0xe] sm:$0xff] }
 0x1cf   : > { %3803 = vmatprep.mubr.msk.f32.mxu0 %vm577_vm0, %v1962_v40 }
 0x1d1   : > { %3671 = vmatmul.mubr.msk.f32.gmra.mrb[32].mxu1 %vm577_vm0, %v1961_v39  ;;  %v2696_v39 = vld [vmem:[#allocation2 + $0x16] sm:$0xff] }
 0x1d2   : > { %3673 = vmatprep.mubr.msk.f32.mxu1 %vm577_vm0, %v1962_v40  ;;  %3804 = vmatmul.mubr.msk.f32.gmra.mrb[8].mxu0 %vm577_vm0, %v1963_v41  ;;  %v2697_v40 = vld [vmem:[#allocation2 + $0x1e] sm:$0xff] }
 0x1d3   : > { %3806 = vmatprep.mubr.msk.f32.mxu0 %vm577_vm0, %v1964_v42 }
 0x1d5   : > { %3674 = vmatmul.mubr.msk.f32.gmra.mrb[34].mxu1 %vm577_vm0, %v1963_v41  ;;  %v2698_v41 = vld [vmem:[#allocation2 + $0x26] sm:$0xff] }
 0x1d6   : > { %3676 = vmatprep.mubr.msk.f32.mxu1 %vm577_vm0, %v1964_v42  ;;  %3807 = vmatmul.mubr.msk.f32.gmra.mrb[10].mxu0 %vm577_vm0, %v1965_v43  ;;  %v2699_v42 = vld [vmem:[#allocation2 + $0x2e] sm:$0xff]  ;;  %v2700_v43 = vld [vmem:[#allocation2 + $0x36] sm:$0xff] }
 0x1d7   : > { %3817 = vmatprep.mubr.msk.f32.mxu0 %vm577_vm0, %v2139_v46 }
 0x1d9   : > { %3677 = vmatmul.mubr.msk.f32.gmra.mrb[36].mxu1 %vm577_vm0, %v969_v47  ;;  %v2704_v47 = vld [vmem:[#allocation2 + $0x56] sm:$0xff] }
 0x1da   : > { %3687 = vmatprep.mubr.msk.f32.mxu1 %vm577_vm0, %v2139_v46  ;;  %3818 = vmatmul.mubr.msk.f32.vlgmr.msra.gmra.mrb[0].mxu0 %vm577_vm0, %v2140_v49  ;;  %v2703_v46 = vld [vmem:[#allocation2 + $0x4e] sm:$0xff] }
 0x1db   : > { %3997 = vmatpush3.bf16.msra.mxu0 %v3994_v30  ;;  %3820 = vmatprep.mubr.msk.f32.mxu0 %vm577_vm0, %v2141_v52  ;;  %v2514_v30 = vld [vmem:[#allocation2 + $0x2d] sm:$0xff] }
 0x1dc   : > { %3999 = vmatprep.subr.bf16.mxu0 %v3998_v48 }
 0x1dd   : > { %3688 = vmatmul.mubr.msk.f32.vlgmr.msra.gmra.mrb[26].mxu1 %vm577_vm0, %v2140_v49  ;;  %v3235_v49 = vld [vmem:[%s4985_s3] ss:$0 sm:$0xff] }
 0x1de   : > { %3690 = vmatprep.mubr.msk.f32.mxu1 %vm577_vm0, %v2141_v52  ;;  %3821 = vmatmul.mubr.msk.f32.gmra.mrb[2].mxu0 %vm577_vm0, %v2142_v56 }
 0x1df   : > { %3823 = vmatprep.mubr.msk.f32.mxu0 %vm577_vm0, %v2143_v58  ;;  %4001 = vmatpush3.bf16.msra.mxu0 %v3998_v48  ;;  %v2705_v48 = vld [vmem:[#allocation2 + $0x5e] sm:$0x3f] }
 0x1e0   : > { %3957 = vmatpush3.bf16.msra.mxu1 %v3954_v37  ;;  %4003 = vmatprep.subr.bf16.mxu0 %v4002_v55  ;;  %v2694_v37 = vld [vmem:[#allocation2 + $0x6] sm:$0xff] }
 0x1e1   : > { %3691 = vmatmul.mubr.msk.f32.gmra.mrb[28].mxu1 %vm577_vm0, %v2142_v56  ;;  %3959 = vmatprep.subr.bf16.mxu1 %v3958_v57 }
 0x1e2   : > { %3693 = vmatprep.mubr.msk.f32.mxu1 %vm577_vm0, %v2143_v58  ;;  %3824 = vmatmul.mubr.msk.f32.gmra.mrb[4].mxu0 %vm577_vm0, %v2144_v59 }
 0x1e3   : > { %3826 = vmatprep.mubr.msk.f32.mxu0 %vm577_vm0, %v2145_v60 }
 0x1e4   : > { %3961 = vmatpush3.bf16.msra.mxu1 %v3958_v57 }
 0x1e5   : > { %3694 = vmatmul.mubr.msk.f32.gmra.mrb[30].mxu1 %vm577_vm0, %v2144_v59 }
 0x1e6   : > { %3696 = vmatprep.mubr.msk.f32.mxu1 %vm577_vm0, %v2145_v60  ;;  %3827 = vmatmul.mubr.msk.f32.gmra.mrb[6].mxu0 %vm577_vm0, %v2146_v61 }
 0x1e7   : > { %3829 = vmatprep.mubr.msk.f32.mxu0 %vm577_vm0, %v2147_v62 }
 0x1e9   : > { %3697 = vmatmul.mubr.msk.f32.gmra.mrb[32].mxu1 %vm577_vm0, %v2146_v61 }
 0x1ea   : > { %3699 = vmatprep.mubr.msk.f32.mxu1 %vm577_vm0, %v2147_v62  ;;  %3830 = vmatmul.mubr.msk.f32.gmra.mrb[8].mxu0 %vm577_vm0, %v2148_v63 }
 0x1eb   : > { %3832 = vmatprep.mubr.msk.f32.mxu0 %vm577_vm0, %v2149_v0 }
 0x1ed   : > { %3700 = vmatmul.mubr.msk.f32.gmra.mrb[34].mxu1 %vm577_vm0, %v2148_v63 }
 0x1ee   : > { %3702 = vmatprep.mubr.msk.f32.mxu1 %vm577_vm0, %v2149_v0  ;;  %3833 = vmatmul.mubr.msk.f32.gmra.mrb[10].mxu0 %vm577_vm0, %v2150_v1 }
 0x1ef   : > { %3843 = vmatprep.mubr.msk.f32.mxu0 %vm577_vm0, %v2324_v4 }
 0x1f1   : > { %3703 = vmatmul.mubr.msk.f32.gmra.mrb[36].mxu1 %vm577_vm0, %v1154_v5 }
 0x1f2   : > { %3713 = vmatprep.mubr.msk.f32.mxu1 %vm577_vm0, %v2324_v4  ;;  %3844 = vmatmul.mubr.msk.f32.vlgmr.msra.gmra.mrb[0].mxu0 %vm577_vm0, %v2325_v7 }
 0x1f3   : > { %4005 = vmatpush3.bf16.msra.mxu0 %v4002_v55  ;;  %3846 = vmatprep.mubr.msk.f32.mxu0 %vm577_vm0, %v2326_v10 }
 0x1f4   : > { %4007 = vmatprep.subr.bf16.mxu0 %v4006_v6 }
 0x1f5   : > { %3714 = vmatmul.mubr.msk.f32.vlgmr.msra.gmra.mrb[26].mxu1 %vm577_vm0, %v2325_v7 }
 0x1f6   : > { %3716 = vmatprep.mubr.msk.f32.mxu1 %vm577_vm0, %v2326_v10  ;;  %3847 = vmatmul.mubr.msk.f32.gmra.mrb[2].mxu0 %vm577_vm0, %v2327_v12 }
 0x1f7   : > { %3849 = vmatprep.mubr.msk.f32.mxu0 %vm577_vm0, %v2328_v13  ;;  %4009 = vmatpush3.bf16.msra.mxu0 %v4006_v6 }
 0x1f8   : > { %4011 = vmatprep.subr.bf16.mxu0 %v4010_v11 }
 0x1f9   : > { %3717 = vmatmul.mubr.msk.f32.gmra.mrb[28].mxu1 %vm577_vm0, %v2327_v12 }
 0x1fa   : > { %3719 = vmatprep.mubr.msk.f32.mxu1 %vm577_vm0, %v2328_v13  ;;  %3850 = vmatmul.mubr.msk.f32.gmra.mrb[4].mxu0 %vm577_vm0, %v2329_v14 }
 0x1fb   : > { %3852 = vmatprep.mubr.msk.f32.mxu0 %vm577_vm0, %v2330_v15 }
 0x1fd   : > { %3720 = vmatmul.mubr.msk.f32.gmra.mrb[30].mxu1 %vm577_vm0, %v2329_v14 }
 0x1fe   : > { %3722 = vmatprep.mubr.msk.f32.mxu1 %vm577_vm0, %v2330_v15  ;;  %3853 = vmatmul.mubr.msk.f32.gmra.mrb[6].mxu0 %vm577_vm0, %v2331_v16 }
 0x1ff   : > { %3855 = vmatprep.mubr.msk.f32.mxu0 %vm577_vm0, %v2332_v17 }
 0x201   : > { %3723 = vmatmul.mubr.msk.f32.gmra.mrb[32].mxu1 %vm577_vm0, %v2331_v16 }
 0x202   : > { %3725 = vmatprep.mubr.msk.f32.mxu1 %vm577_vm0, %v2332_v17  ;;  %3856 = vmatmul.mubr.msk.f32.gmra.mrb[8].mxu0 %vm577_vm0, %v2333_v18 }
 0x203   : > { %3858 = vmatprep.mubr.msk.f32.mxu0 %vm577_vm0, %v2334_v19 }
 0x205   : > { %3726 = vmatmul.mubr.msk.f32.gmra.mrb[34].mxu1 %vm577_vm0, %v2333_v18 }
 0x206   : > { %3728 = vmatprep.mubr.msk.f32.mxu1 %vm577_vm0, %v2334_v19  ;;  %3859 = vmatmul.mubr.msk.f32.gmra.mrb[10].mxu0 %vm577_vm0, %v2335_v20  ;;  %v2936_v19 = vld [vmem:[%s4988_s6 + $0x8] sm:$0xff] }
 0x207   : > { %3869 = vmatprep.mubr.msk.f32.mxu0 %vm577_vm0, %v2509_v23  ;;  %v2935_v23 = vld [vmem:[%s4988_s6] sm:$0xff] }
 0x209   : > { %3729 = vmatmul.mubr.msk.f32.gmra.mrb[36].mxu1 %vm577_vm0, %v1339_v24 }
 0x20a   : > { %3870 = vmatmul.mubr.msk.f32.vlgmr.msra.gmra.mrb[0].mxu0 %vm577_vm0, %v2510_v26  ;;  %v2937_v26 = vld [vmem:[%s4988_s6 + $0x10] sm:$0xff] }
 0x20b   : > { %4013 = vmatpush3.bf16.msra.mxu0 %v4010_v11  ;;  %3872 = vmatprep.mubr.msk.f32.mxu0 %vm577_vm0, %v2511_v27 }
 0x20c   : > { %4015 = vmatprep.subr.bf16.mxu0 %v4014_v25 }
 0x20e   : > { %3873 = vmatmul.mubr.msk.f32.gmra.mrb[2].mxu0 %vm577_vm0, %v2512_v28 }
 0x20f   : > { %3875 = vmatprep.mubr.msk.f32.mxu0 %vm577_vm0, %v2513_v29  ;;  %4017 = vmatpush3.bf16.msra.mxu0 %v4014_v25  ;;  %v2938_v29 = vld [vmem:[%s4988_s6 + $0x18] sm:$0xff] }
 0x212   : > { %3876 = vmatmul.mubr.msk.f32.gmra.mrb[4].mxu0 %vm577_vm0, %v2514_v30 }
 0x213   : > { %3878 = vmatprep.mubr.msk.f32.mxu0 %vm577_vm0, %v2515_v31 }
 0x216   : > { %3879 = vmatmul.mubr.msk.f32.gmra.mrb[6].mxu0 %vm577_vm0, %v2516_v32 }
 0x217   : > { %3881 = vmatprep.mubr.msk.f32.mxu0 %vm577_vm0, %v2517_v33 }
 0x21a   : > { %3882 = vmatmul.mubr.msk.f32.gmra.mrb[8].mxu0 %vm577_vm0, %v2518_v34 }
 0x21b   : > { %3884 = vmatprep.mubr.msk.f32.mxu0 %vm577_vm0, %v2519_v35 }
 0x21e   : > { %3885 = vmatmul.mubr.msk.f32.gmra.mrb[10].mxu0 %vm577_vm0, %v2520_v36 }
 0x21f   : > { %3895 = vmatprep.mubr.msk.f32.mxu0 %vm577_vm0, %v2694_v37 }
 0x222   : > { %3896 = vmatmul.mubr.msk.f32.vlgmr.msra.gmra.mrb[0].mxu0 %vm577_vm0, %v2695_v38  ;;  %v2939_v38 = vld [vmem:[%s4988_s6 + $0x20] sm:$0xff] }
 0x223   : > { %3898 = vmatprep.mubr.msk.f32.mxu0 %vm577_vm0, %v2696_v39 }
 0x226   : > { %3899 = vmatmul.mubr.msk.f32.gmra.mrb[2].mxu0 %vm577_vm0, %v2697_v40 }
 0x227   : > { %3901 = vmatprep.mubr.msk.f32.mxu0 %vm577_vm0, %v2698_v41 }
 0x22a   : > { %3902 = vmatmul.mubr.msk.f32.gmra.mrb[4].mxu0 %vm577_vm0, %v2699_v42 }
 0x22b   : > { %3904 = vmatprep.mubr.msk.f32.mxu0 %vm577_vm0, %v2700_v43 }
 0x22e   : > { %3905 = vmatmul.mubr.msk.f32.gmra.mrb[6].mxu0 %vm577_vm0, %v2701_v44 }
 0x22f   : > { %3907 = vmatprep.mubr.msk.f32.mxu0 %vm577_vm0, %v2702_v45 }
 0x232   : > { %3908 = vmatmul.mubr.msk.f32.gmra.mrb[8].mxu0 %vm577_vm0, %v2703_v46 }
 0x233   : > { %3910 = vmatprep.mubr.msk.f32.mxu0 %vm577_vm0, %v2704_v47 }
 0x236   : > { %3911 = vmatmul.mubr.msk.f32.gmra.mrb[10].mxu0 %vm577_vm0, %v2705_v48  ;;  %v2940_v48 = vld [vmem:[%s4988_s6 + $0x28] sm:$0xff] }
 0x2c8   : > { %v3715_v50 = vpop.f32.mrb[26].mxu1 }
 0x2c9   : > { %v1521_v51 = vadd.f32 %v3715_v50, %v3235_v49  ;;  %v1442_v52 = vpop.f32.mrb[27].mxu1 }
 0x2ca   : > { %v1520_v53 = vadd.f32 %v3235_v49, %v1442_v52 }
 0x2cb   : > { %1534 = vst.msk [vmem:[#allocation3 + $0x8] sm:$0xff] %vm1532_vm2, %v1521_v51 }
 0x2cc   : > { %1533 = vst.msk [vmem:[#allocation3] sm:$0xff] %vm1532_vm2, %v1520_v53  ;;  %v3718_v54 = vpop.f32.mrb[28].mxu1 }
 0x2cd   : > { %v1523_v55 = vadd.f32 %v3718_v54, %v3235_v49  ;;  %v1452_v56 = vpop.f32.mrb[29].mxu1 }
 0x2ce   : > { %v1522_v57 = vadd.f32 %v3235_v49, %v1452_v56 }
 0x2cf   : > { %1536 = vst.msk [vmem:[#allocation3 + $0x18] sm:$0xff] %vm1532_vm2, %v1523_v55 }
 0x2d0   : > { %1535 = vst.msk [vmem:[#allocation3 + $0x10] sm:$0xff] %vm1532_vm2, %v1522_v57  ;;  %v3721_v58 = vpop.f32.mrb[30].mxu1 }
 0x2d1   : > { %v1525_v59 = vadd.f32 %v3721_v58, %v3235_v49  ;;  %v1462_v60 = vpop.f32.mrb[31].mxu1  ;;  %v4823_v58 = vld [vmem:[%s4987_s5] ss:$0 sm:$0xff] }
 0x2d2   : > { %v1524_v61 = vadd.f32 %v3235_v49, %v1462_v60 }
 0x2d3   : > { %1538 = vst.msk [vmem:[#allocation3 + $0x28] sm:$0xff] %vm1532_vm2, %v1525_v59  ;;  %v1545_v2 = vld [vmem:[#allocation3] ss:$2 sm:$0xff]  ;;  %v1557_v3 = vld [vmem:[#allocation3 + $0x1] ss:$2 sm:$0xff] }
 0x2d4   : > { %1537 = vst.msk [vmem:[#allocation3 + $0x20] sm:$0xff] %vm1532_vm2, %v1524_v61  ;;  %v3724_v62 = vpop.f32.mrb[32].mxu1  ;;  %v1568_v11 = vmax.f32 %v1545_v2, %v1557_v3 }
 0x2d5   : > { %v1527_v63 = vadd.f32 %v3724_v62, %v3235_v49  ;;  %v1472_v0 = vpop.f32.mrb[33].mxu1 }
 0x2d6   : > { %v1526_v1 = vadd.f32 %v3235_v49, %v1472_v0  ;;  %v4781_v21 = vmax.f32 %v1568_v11, 0.0 }
 0x2d7   : > { %1540 = vst.msk [vmem:[#allocation3 + $0x38] sm:$0xff] %vm1532_vm2, %v1527_v63  ;;  %v1547_v4 = vld [vmem:[#allocation3 + $0x10] ss:$2 sm:$0xff]  ;;  %v1559_v5 = vld [vmem:[#allocation3 + $0x11] ss:$2 sm:$0xff] }
 0x2d8   : > { %1539 = vst.msk [vmem:[#allocation3 + $0x30] sm:$0xff] %vm1532_vm2, %v1526_v1  ;;  %v3727_v6 = vpop.f32.mrb[34].mxu1  ;;  %v1569_v7 = vmax.f32 %v1547_v4, %v1559_v5  ;;  %v2941_v31 = vmul.f32 %v2935_v23, %v4781_v21 }
 0x2d9   : > { %v1529_v8 = vadd.f32 %v3727_v6, %v3235_v49  ;;  %v1482_v9 = vpop.f32.mrb[35].mxu1 }
 0x2da   : > { %v1528_v10 = vadd.f32 %v3235_v49, %v1482_v9  ;;  %v4776_v16 = vmax.f32 %v1569_v7, 0.0  ;;  %v2947_v40 = vsel %vm1532_vm2, %v2941_v31, 0.0 }
 0x2db   : > { %1542 = vst.msk [vmem:[#allocation3 + $0x48] sm:$0xff] %vm1532_vm2, %v1529_v8  ;;  %v1549_v12 = vld [vmem:[#allocation3 + $0x20] ss:$2 sm:$0xff]  ;;  %v1561_v13 = vld [vmem:[#allocation3 + $0x21] ss:$2 sm:$0xff] }
 0x2dc   : > { %1541 = vst.msk [vmem:[#allocation3 + $0x40] sm:$0xff] %vm1532_vm2, %v1528_v10  ;;  %v3730_v14 = vpop.f32.mrb[36].mxu1  ;;  %v1570_v15 = vmax.f32 %v1549_v12, %v1561_v13  ;;  %v2942_v28 = vmul.f32 %v2936_v19, %v4776_v16  ;;  %v3322_v13 = vld [vmem:[%s4988_s6 + $0x68] sm:$0xff]  ;;  %v3323_v19 = vld [vmem:[%s4988_s6 + $0x70] sm:$0xff] }
 0x2dd   : > { %v1531_v17 = vadd.f32 %v3730_v14, %v3235_v49  ;;  %v1492_v18 = vpop.f32.mrb[37].mxu1 }
 0x2de   : > { %v1530_v20 = vadd.f32 %v3235_v49, %v1492_v18  ;;  %v4783_v22 = vmax.f32 %v1570_v15, 0.0  ;;  %v2948_v37 = vsel %vm1532_vm2, %v2942_v28, 0.0  ;;  %v3321_v18 = vld [vmem:[%s4988_s6 + $0x60] sm:$0xff]  ;;  %v3324_v28 = vld [vmem:[%s4988_s6 + $0x78] sm:$0xff] }
 0x2df   : > { %1544 = vst.msk [vmem:[#allocation3 + $0x58] sm:$0xff] %vm1532_vm2, %v1531_v17  ;;  %v1551_v24 = vld [vmem:[#allocation3 + $0x30] ss:$2 sm:$0xff]  ;;  %v1563_v25 = vld [vmem:[#allocation3 + $0x31] ss:$2 sm:$0xff]  ;;  %v2949_v44 = vadd.f32 %v2948_v37, %v2947_v40 }
 0x2e0   : > { %1543 = vst.msk [vmem:[#allocation3 + $0x50] sm:$0xff] %vm1532_vm2, %v1530_v20  ;;  %v1571_v27 = vmax.f32 %v1551_v24, %v1563_v25  ;;  %v2943_v32 = vmul.f32 %v2937_v26, %v4783_v22  ;;  %v3013_v25 = vmul.f32 %v3322_v13, %v4776_v16 }
 0x2e2   : > { %v4797_v30 = vmax.f32 %v1571_v27, 0.0  ;;  %v2950_v41 = vsel %vm1532_vm2, %v2943_v32, 0.0  ;;  %v3012_v32 = vmul.f32 %v3321_v18, %v4781_v21  ;;  %v3019_v21 = vsel %vm1532_vm2, %v3013_v25, 0.0  ;;  %v3331_v25 = vld [vmem:[%s4988_s6 + $0xb0] sm:$0xff] }
 0x2e3   : > { %v1553_v33 = vld [vmem:[#allocation3 + $0x40] ss:$2 sm:$0xff]  ;;  %v1565_v34 = vld [vmem:[#allocation3 + $0x41] ss:$2 sm:$0xff]  ;;  %v2951_v49 = vadd.f32 %v2950_v41, %v2949_v44 }
 0x2e4   : > { %v1572_v35 = vmax.f32 %v1553_v33, %v1565_v34  ;;  %v2944_v36 = vmul.f32 %v2938_v29, %v4797_v30  ;;  %v3014_v33 = vmul.f32 %v3323_v19, %v4783_v22  ;;  %v3015_v40 = vmul.f32 %v3324_v28, %v4797_v30 }
 0x2e5   : > { %v3018_v30 = vsel %vm1532_vm2, %v3012_v32, 0.0 }
 0x2e6   : > { %v4806_v39 = vmax.f32 %v1572_v35, 0.0  ;;  %v2952_v47 = vsel %vm1532_vm2, %v2944_v36, 0.0  ;;  %v3325_v36 = vld [vmem:[%s4988_s6 + $0x80] sm:$0xff] }
 0x2e7   : > { %v1555_v42 = vld [vmem:[#allocation3 + $0x50] ss:$2 sm:$0xff]  ;;  %v1567_v43 = vld [vmem:[#allocation3 + $0x51] ss:$2 sm:$0xff]  ;;  %v2953_v52 = vadd.f32 %v2952_v47, %v2951_v49  ;;  %v3021_v47 = vsel %vm1532_vm2, %v3014_v33, 0.0 }
 0x2e8   : > { %v1573_v45 = vmax.f32 %v1555_v42, %v1567_v43  ;;  %v2945_v46 = vmul.f32 %v2939_v38, %v4806_v39  ;;  %v3326_v38 = vld [vmem:[%s4988_s6 + $0x88] sm:$0xff] }
 0x2ea   : > { %v4815_v50 = vmax.f32 %v1573_v45, 0.0  ;;  %v2954_v51 = vsel %vm1532_vm2, %v2945_v46, 0.0  ;;  %v2968_v45 = vld [vmem:[%s4988_s6 + $0x38] sm:$0xff]  ;;  %v3016_v46 = vmul.f32 %v3325_v36, %v4806_v39  ;;  %v2967_v39 = vld [vmem:[%s4988_s6 + $0x30] sm:$0xff] }
 0x2eb   : > { %v2955_v54 = vadd.f32 %v2954_v51, %v2953_v52  ;;  %v3328_v52 = vld [vmem:[%s4988_s6 + $0x98] sm:$0xff] }
 0x2ec   : > { %v2946_v53 = vmul.f32 %v2940_v48, %v4815_v50 }
 0x2ee   : > { %v2956_v55 = vsel %vm1532_vm2, %v2946_v53, 0.0  ;;  %v3020_v53 = vadd.f32 %v3019_v21, %v3018_v30  ;;  %v2972_v21 = vld [vmem:[%s4988_s6 + $0x58] sm:$0x7f] }
 0x2ef   : > { %v2957_v56 = vadd.f32 %v2956_v55, %v2955_v54 }
 0x2f1   : > { %v2958_v57 = vrot.slane %v2957_v56, 4 }
 0x2f3   : > { %v2959_v59 = vadd.f32 %v2958_v57, %v2957_v56  ;;  %v2969_v56 = vld [vmem:[%s4988_s6 + $0x40] sm:$0xff]  ;;  %v3327_v57 = vld [vmem:[%s4988_s6 + $0x90] sm:$0xff] }
 0x2f5   : > { %v3897_v60 = vpop.f32.mrb[0].mxu0  ;;  %v2960_v61 = vrot.slane %v2959_v59, 2 }
 0x2f6   : > { %v2887_v62 = vadd.f32 %v3897_v60, %v4823_v58  ;;  %v2808_v63 = vpop.f32.mrb[1].mxu0  ;;  %v3023_v60 = vsel %vm1532_vm2, %v3015_v40, 0.0 }
 0x2f7   : > { %v2886_v0 = vadd.f32 %v4823_v58, %v2808_v63  ;;  %v2961_v1 = vadd.f32 %v2960_v61, %v2959_v59  ;;  %v3017_v59 = vmul.f32 %v3326_v38, %v4815_v50  ;;  %v3329_v63 = vld [vmem:[%s4988_s6 + $0xa0] sm:$0xff]  ;;  %v2970_v50 = vld [vmem:[%s4988_s6 + $0x48] sm:$0xff] }
 0x2f8   : > { %2899 = vst.msk [vmem:[#allocation3 + $0x8] sm:$0xff] %vm1532_vm2, %v2887_v62 }
 0x2f9   : > { %2898 = vst.msk [vmem:[#allocation3] sm:$0xff] %vm1532_vm2, %v2886_v0  ;;  %v3900_v2 = vpop.f32.mrb[2].mxu0  ;;  %v2962_v3 = vrot.slane %v2961_v1, 1  ;;  %v3022_v0 = vadd.f32 %v3021_v47, %v3020_v53 }
 0x2fa   : > { %v2889_v4 = vadd.f32 %v3900_v2, %v4823_v58  ;;  %v2818_v5 = vpop.f32.mrb[3].mxu0 }
 0x2fb   : > { %v2888_v6 = vadd.f32 %v4823_v58, %v2818_v5  ;;  %v2963_v7 = vadd.f32 %v2962_v3, %v2961_v1  ;;  %v3025_v3 = vsel %vm1532_vm2, %v3016_v46, 0.0  ;;  %v3330_v5 = vld [vmem:[%s4988_s6 + $0xa8] sm:$0xff] }
 0x2fc   : > { %2901 = vst.msk [vmem:[#allocation3 + $0x18] sm:$0xff] %vm1532_vm2, %v2889_v4 }
 0x2fd   : > { %2900 = vst.msk [vmem:[#allocation3 + $0x10] sm:$0xff] %vm1532_vm2, %v2888_v6  ;;  %v3903_v8 = vpop.f32.mrb[4].mxu0  ;;  %v2964_v9 = vsel %vm1532_vm2, %v2963_v7, 0.0  ;;  %v3024_v7 = vadd.f32 %v3023_v60, %v3022_v0 }
 0x2fe   : > { %v2891_v10 = vadd.f32 %v3903_v8, %v4823_v58  ;;  %v2828_v11 = vpop.f32.mrb[5].mxu0  ;;  %2965 = vadd.xlane.f32.xlu1 %v2964_v9 }
 0x2ff   : > { %v2890_v12 = vadd.f32 %v4823_v58, %v2828_v11  ;;  %v3027_v11 = vsel %vm1532_vm2, %v3017_v59, 0.0 }
 0x300   : > { %2903 = vst.msk [vmem:[#allocation3 + $0x28] sm:$0xff] %vm1532_vm2, %v2891_v10  ;;  %v2911_v23 = vld [vmem:[#allocation3] ss:$2 sm:$0xff]  ;;  %v2917_v24 = vld [vmem:[#allocation3 + $0x1] ss:$2 sm:$0xff] }
 0x301   : > { %2902 = vst.msk [vmem:[#allocation3 + $0x20] sm:$0xff] %vm1532_vm2, %v2890_v12  ;;  %v3906_v14 = vpop.f32.mrb[6].mxu0  ;;  %v2923_v16 = vmax.f32 %v2911_v23, %v2917_v24  ;;  %v2971_v23 = vld [vmem:[%s4988_s6 + $0x50] sm:$0xff] }
 0x302   : > { %v2893_v15 = vadd.f32 %v3906_v14, %v4823_v58  ;;  %v2838_v17 = vpop.f32.mrb[7].mxu0 }
 0x303   : > { %v2892_v20 = vadd.f32 %v4823_v58, %v2838_v17  ;;  %v2929_v51 = vmax.f32 %v2923_v16, 0.0 }
 0x304   : > { %2905 = vst.msk [vmem:[#allocation3 + $0x38] sm:$0xff] %vm1532_vm2, %v2893_v15  ;;  %v2912_v26 = vld [vmem:[#allocation3 + $0x10] ss:$2 sm:$0xff]  ;;  %v2918_v27 = vld [vmem:[#allocation3 + $0x11] ss:$2 sm:$0xff]  ;;  %v3026_v15 = vadd.f32 %v3025_v3, %v3024_v7 }
 0x305   : > { %2904 = vst.msk [vmem:[#allocation3 + $0x30] sm:$0xff] %vm1532_vm2, %v2892_v20  ;;  %v3909_v29 = vpop.f32.mrb[8].mxu0  ;;  %v2924_v31 = vmax.f32 %v2912_v26, %v2918_v27  ;;  %v2973_v4 = vmul.f32 %v2967_v39, %v2929_v51  ;;  %v3044_v6 = vmul.f32 %v3327_v57, %v2929_v51 }
 0x306   : > { %v2895_v34 = vadd.f32 %v3909_v29, %v4823_v58  ;;  %v2848_v35 = vpop.f32.mrb[9].mxu0  ;;  %v3028_v27 = vadd.f32 %v3027_v11, %v3026_v15 }
 0x307   : > { %v2894_v37 = vadd.f32 %v4823_v58, %v2848_v35  ;;  %v2930_v42 = vmax.f32 %v2924_v31, 0.0  ;;  %v2979_v24 = vsel %vm1532_vm2, %v2973_v4, 0.0  ;;  %v3050_v26 = vsel %vm1532_vm2, %v3044_v6, 0.0 }
 0x308   : > { %2907 = vst.msk [vmem:[#allocation3 + $0x48] sm:$0xff] %vm1532_vm2, %v2895_v34  ;;  %v2913_v22 = vld [vmem:[#allocation3 + $0x20] ss:$2 sm:$0xff]  ;;  %v2919_v41 = vld [vmem:[#allocation3 + $0x21] ss:$2 sm:$0xff] }
 0x309   : > { %2906 = vst.msk [vmem:[#allocation3 + $0x40] sm:$0xff] %vm1532_vm2, %v2894_v37  ;;  %v3912_v43 = vpop.f32.mrb[10].mxu0  ;;  %v2925_v44 = vmax.f32 %v2913_v22, %v2919_v41  ;;  %v2974_v62 = vmul.f32 %v2968_v45, %v2930_v42  ;;  %v3045_v2 = vmul.f32 %v3328_v52, %v2930_v42  ;;  %v3332_v41 = vld [vmem:[%s4988_s6 + $0xb8] sm:$0x7f] }
 0x30a   : > { %v2897_v48 = vadd.f32 %v3912_v43, %v4823_v58  ;;  %v2858_v49 = vpop.f32.mrb[11].mxu0  ;;  %v3029_v43 = vrot.slane %v3028_v27, 4 }
 0x30b   : > { %v2896_v54 = vadd.f32 %v4823_v58, %v2858_v49  ;;  %v2931_v55 = vmax.f32 %v2925_v44, 0.0  ;;  %v2980_v14 = vsel %vm1532_vm2, %v2974_v62, 0.0  ;;  %v3051_v20 = vsel %vm1532_vm2, %v3045_v2, 0.0 }
 0x30c   : > { %2910 = vst.msk [vmem:[#allocation3 + $0x58] sm:$0x3f] %vm2909_vm3, %v2897_v48  ;;  %v2914_v58 = vld [vmem:[#allocation3 + $0x30] ss:$2 sm:$0xff]  ;;  %v2920_v61 = vld [vmem:[#allocation3 + $0x31] ss:$2 sm:$0xff]  ;;  %v2981_v35 = vadd.f32 %v2980_v14, %v2979_v24  ;;  %v3052_v16 = vadd.f32 %v3051_v20, %v3050_v26  ;;  %v3030_v53 = vadd.f32 %v3029_v43, %v3028_v27 }
 0x30d   : > { %2908 = vst.msk [vmem:[#allocation3 + $0x50] sm:$0xff] %vm1532_vm2, %v2896_v54  ;;  %v2926_v1 = vmax.f32 %v2914_v58, %v2920_v61  ;;  %v2975_v9 = vmul.f32 %v2969_v56, %v2931_v55  ;;  %v3046_v10 = vmul.f32 %v3329_v63, %v2931_v55 }
 0x30e   : > { %v3031_v60 = vrot.slane %v3030_v53, 2 }
 0x30f   : > { %v2932_v8 = vmax.f32 %v2926_v1, 0.0  ;;  %v2982_v29 = vsel %vm1532_vm2, %v2975_v9, 0.0  ;;  %v3053_v32 = vsel %vm1532_vm2, %v3046_v10, 0.0 }
 0x310   : > { %v2915_v12 = vld [vmem:[#allocation3 + $0x40] ss:$2 sm:$0xff]  ;;  %v2921_v13 = vld [vmem:[#allocation3 + $0x41] ss:$2 sm:$0xff]  ;;  %v2983_v22 = vadd.f32 %v2982_v29, %v2981_v35  ;;  %v3054_v42 = vadd.f32 %v3053_v32, %v3052_v16  ;;  %v3032_v0 = vadd.f32 %v3031_v60, %v3030_v53 }
 0x311   : > { %v2927_v17 = vmax.f32 %v2915_v12, %v2921_v13  ;;  %v2976_v18 = vmul.f32 %v2970_v50, %v2932_v8  ;;  %v3047_v19 = vmul.f32 %v3330_v5, %v2932_v8  ;;  %v3001_v12 = vld [vmem:[%s4989_s7] sm:$0x1] }
 0x312   : > { %v3033_v4 = vrot.slane %v3032_v0, 1 }
 0x313   : > { %v2933_v28 = vmax.f32 %v2927_v17, 0.0  ;;  %v2984_v31 = vsel %vm1532_vm2, %v2976_v18, 0.0  ;;  %v3055_v40 = vsel %vm1532_vm2, %v3047_v19, 0.0  ;;  %v3071_v18 = vld [vmem:[%s4989_s7] sm:$0x1] }
 0x314   : > { %v2916_v33 = vld [vmem:[#allocation3 + $0x50] ss:$2 sm:$0x7f]  ;;  %v2922_v34 = vld [vmem:[#allocation3 + $0x51] ss:$2 sm:$0x7f]  ;;  %v2985_v30 = vadd.f32 %v2984_v31, %v2983_v22  ;;  %v3056_v47 = vadd.f32 %v3055_v40, %v3054_v42  ;;  %v3034_v9 = vadd.f32 %v3033_v4, %v3032_v0 }
 0x315   : > { %v2928_v36 = vmax.f32 %v2916_v33, %v2922_v34  ;;  %v2977_v37 = vmul.f32 %v2971_v23, %v2933_v28  ;;  %v3048_v38 = vmul.f32 %v3331_v25, %v2933_v28 }
 0x316   : > { %v3035_v10 = vsel %vm1532_vm2, %v3034_v9, 0.0 }
 0x317   : > { %v2934_v44 = vmax.f32 %v2928_v36, 0.0  ;;  %v2986_v45 = vsel %vm1532_vm2, %v2977_v37, 0.0  ;;  %v3057_v46 = vsel %vm1532_vm2, %v3048_v38, 0.0 }
 0x318   : > { %v2987_v51 = vadd.f32 %v2986_v45, %v2985_v30  ;;  %v3058_v52 = vadd.f32 %v3057_v46, %v3056_v47 }
 0x319   : > { %v2978_v48 = vmul.f32 %v2972_v21, %v2934_v44  ;;  %v3049_v49 = vmul.f32 %v3332_v41, %v2934_v44 }
 0x31b   : > { %v2989_v54 = vsel %vm2988_vm4, %v2978_v48, 0.0  ;;  %v3059_v55 = vsel %vm2988_vm4, %v3049_v49, 0.0 }
 0x31c   : > { %v2990_v39 = vadd.f32 %v2989_v54, %v2987_v51  ;;  %v3060_v56 = vadd.f32 %v3059_v55, %v3058_v52 }
 0x31e   : > { %v2991_v57 = vrot.slane %v2990_v39, 4  ;;  %v3061_v59 = vrot.slane %v3060_v56, 4 }
 0x320   : > { %v2992_v58 = vadd.f32 %v2991_v57, %v2990_v39  ;;  %v3062_v61 = vadd.f32 %v3061_v59, %v3060_v56 }
 0x322   : > { %v2993_v62 = vrot.slane %v2992_v58, 2  ;;  %v3063_v63 = vrot.slane %v3062_v61, 2 }
 0x324   : > { %v2994_v1 = vadd.f32 %v2993_v62, %v2992_v58  ;;  %v3064_v2 = vadd.f32 %v3063_v63, %v3062_v61 }
 0x326   : > { %v2995_v3 = vrot.slane %v2994_v1, 1  ;;  %v3065_v50 = vrot.slane %v3064_v2, 1 }
 0x328   : > { %v2996_v5 = vadd.f32 %v2995_v3, %v2994_v1  ;;  %v3066_v6 = vadd.f32 %v3065_v50, %v3064_v2 }
 0x32a   : > { %v2997_v7 = vsel %vm1532_vm2, %v2996_v5, 0.0  ;;  %v3067_v8 = vsel %vm1532_vm2, %v3066_v6, 0.0 }
 0x32b   : > { %2998 = vadd.xlane.f32.xlu0 %v2997_v7  ;;  %3068 = vadd.xlane.f32.xlu1 %v3067_v8 }
 0x32f   : > { %3036 = vadd.xlane.f32.xlu0 %v3035_v10 }
 0x38b   : > { %v2966_v11 = vpop.xlane.xlu1 %2965 }
 0x3b8   : > { %v2999_v13 = vpop.xlane.xlu0 %2998  ;;  %v3069_v17 = vpop.xlane.xlu1 %3068 }
 0x3b9   : > { %v3000_v14 = vadd.f32 %v2999_v13, %v2966_v11 }
 0x3bb   : > { %v3002_v15 = vadd.f32 %v3001_v12, %v3000_v14 }
 0x3bc   : > { %v3037_v19 = vpop.xlane.xlu0 %3036 }
 0x3bd   : > { %v3070_v20 = vadd.f32 %v3069_v17, %v3037_v19  ;;  %3004 = vst.msk [vmem:[%s297_s21] sm:$0x1] %vm3003_vm5, %v3002_v15 }
 0x3bf   : > { %v3072_v23 = vadd.f32 %v3071_v18, %v3070_v20 }
 0x3c1   : > { %3074 = vst.msk [vmem:[%s297_s21] sm:$0x1] %vm3073_vm6, %v3072_v23 }
 0x3c2   : > { %4197 = shalt.err (!%p4194_p3)
}
 0x3c3   : > { %s4198_s12 = scalar_lea.hbm %s4940_s25, 16  ;;  %s4202_s20 = scalar_lea.hbm %s4990_s8, 32 }
 0x3c4   : > { %p4199_p4 = scmp.ne.s32.totalorder %s4940_s25, %s4198_s12  ;;  %p4203_p9 = scmp.lt.u32.totalorder %s4940_s25, %s4990_s8 }
 0x3c5   : > { %p4204_p10 = scmp.lt.u32.totalorder %s4202_s20, %s4198_s12  ;;  %p4206_p12 = scmp.lt.u32.totalorder %s4198_s12, %s4940_s25 }
 0x3c6   : > { %p4200_p7 = pnand %p4199_p4, %p4336_p5 }
 0x3c7   : > { %p4205_p11 = por %p4204_p10, %p4203_p9 }
 0x3c8   : > { %p4201_p8 = pneg %p4200_p7 }
 0x3c9   : > { %p4207_p13 = por %p4206_p12, %p4205_p11 }
 0x3cb   : > { %p4208_p0 = pnand %p4207_p13, %p4201_p8 }
 0x3cd   : > { %4211 = shalt.err (!%p4208_p0)
}
 0x3ce   : > { %4139 = dma.vmem_to_hbm [thread:$0]  (%p4336_p5), %s4942_s22, 16, %s4940_s25, %s3076_s26  }
 0x3cf PF: > { %p4145_p1 = scmp.ge.s32.totalorder %s4246_s30, 2  ;;  %s3100_s24 = sand.u32 1, %s4234_s27  }
 0x3d0   : > { %s3101_s10 = scalar_lea.sflag [#allocation5], %s3100_s24 }
 0x3d1   : > { %p4142_p2 = pnand %p4145_p1, %p4340_p6 }
 0x3d3   : > { %4229 = dma.done.wait (!%p4142_p2), %s3101_s10, 16  }
 0x3d4   : > { %4231 = vsyncadd (!%p4142_p2), %s3101_s10, 4294967280  ;;  %p18_p3 = scmp.ge.s32.totalorder %s4323_s11, 4   ;;  %s4993_s27 = smov %s4238_s28 }
 0x3d5   : > { %s4994_s28 = smov %s4242_s29  ;;  %s4995_s29 = smov %s4334_s14 }
 0x3d6   : > { %s4996_s30 = smov %s4323_s11  ;;  %20 = sbr.rel (!%p18_p3) target bundleno = 3 (0x3), region = 99 }
 0x3dd   :  { %3105 = vsyncpa [#allocation5], 1 }
 0x3de   :  { %3107 = vsyncpa [#allocation5 + $0x1], 1 }

</bundles_post_ra>
